<compile_context>
chip_gen: v7x
topology: tpu7x:2x2x1
jax: 0.10.0
libtpu: 0.0.40
codegen_flags: <defaults>
</compile_context>

<pallas_src>
import math

import jax
import jax.numpy as jnp
import numpy as np
from jax.experimental import pallas as pl
from jax.experimental.pallas import tpu as pltpu


def _relu6(x):
    return jnp.clip(x, 0.0, 6.0)


def _round_up(x, m):
    return ((x + m - 1) // m) * m


# ------------------------------ parameter setup ------------------------------
def make_mscb_params(key, in_channels, out_channels, kernel_sizes=(1, 3, 5),
                     expansion_factor=2):
    ex = in_channels * expansion_factor
    n = len(kernel_sizes)
    keys = jax.random.split(key, 3 + n)
    std = 0.02          # _init_weights 'normal' scheme
    eps = 1e-5          # PyTorch BatchNorm2d default

    def bn_fold(C):
        gamma = jnp.ones((C,), jnp.float32)
        beta = jnp.zeros((C,), jnp.float32)
        mean = jnp.zeros((C,), jnp.float32)
        var = jnp.ones((C,), jnp.float32)
        scale = gamma / jnp.sqrt(var + eps)
        bias = beta - mean * scale
        return scale, bias

    params = {}
    # 1x1 convs stored in matmul form (Cin, Cout) == torch weight[o, c, 0, 0].T
    params["w_p1"] = std * jax.random.normal(keys[0], (in_channels, ex), jnp.float32)
    params["bn1"] = bn_fold(ex)
    # depthwise weights stored as (k, k, C) == torch weight[c, 0, ky, kx] -> [ky, kx, c]
    params["w_dw"] = [std * jax.random.normal(keys[3 + i], (k, k, ex), jnp.float32)
                      for i, k in enumerate(kernel_sizes)]
    sc_e, bi_e = bn_fold(ex)
    params["bn_dw"] = (jnp.tile(sc_e[None], (n, 1)), jnp.tile(bi_e[None], (n, 1)))
    params["w_p2"] = std * jax.random.normal(keys[1], (ex, out_channels), jnp.float32)
    params["bn2"] = bn_fold(out_channels)
    params["w_skip"] = std * jax.random.normal(keys[2], (in_channels, out_channels),
                                               jnp.float32)
    return params


# --------------------------- fused MSCB forward pass --------------------------
def mscb_forward(x_nchw, params, kernel_sizes=(1, 3, 5)):
    # stride=1, dw_parallel=True, add=True, activation='relu6'
    B, Cin, H, W = x_nchw.shape
    ex = params["w_p1"].shape[1]
    Cout = params["w_p2"].shape[1]
    n = len(kernel_sizes)
    pad = max(kernel_sizes) // 2
    Hp, Wp = H + 2 * pad, W + 2 * pad
    Sp = Hp * Wp
    Sp_out = _round_up(Sp, 128)          # lane-dense compute/store width
    reach = pad * Wp + pad               # max |flattened tap offset|
    margin = _round_up(reach, 64)        # left margin: every tap slice stays in bounds
    Se = _round_up(margin + reach + Sp_out, 128)
    comb = ex                            # add=True
    identity_skip = (Cin == Cout)

    # ---- fold BatchNorm (eval mode) + channel shuffle, build channels-first weights ----
    s1, b1 = params["bn1"]
    w1_cf = (params["w_p1"] * s1[None, :]).T                       # (ex, Cin)
    b1_col = b1.reshape(ex, 1)

    sc_dw, bi_dw = params["bn_dw"]                                 # (n, ex) each
    dw_cf = []
    for i, k in enumerate(kernel_sizes):
        w = params["w_dw"][i] * sc_dw[i][None, None, :]            # (k, k, ex)
        dw_cf.append(jnp.transpose(w, (2, 0, 1)).reshape(ex, k * k))  # (ex, k*k)
    dwb_cf = bi_dw.T                                               # (ex, n)

    s2, b2 = params["bn2"]
    w2 = params["w_p2"] * s2[None, :]                              # (comb, Cout)
    g = math.gcd(comb, Cout)
    perm = np.arange(comb).reshape(g, comb // g).T.reshape(-1)     # channel_shuffle perm
    w2_sh_T = w2[np.argsort(perm)].T                               # (Cout, comb)
    b2_col = b2.reshape(Cout, 1)
    if identity_skip:
        w_out = w2_sh_T                                            # (Cout, comb)
    else:
        # fused pconv2 + conv1x1-skip: one stacked weight, one MXU dot in the kernel
        w_out = jnp.concatenate([w2_sh_T, params["w_skip"].T], axis=1)  # (Cout, comb+Cin)

    # ---- input layout prep: channels-first, zero-padded flattened frame, lane-dense ----
    x = x_nchw.astype(jnp.float32)
    x_pad = jnp.pad(x, ((0, 0), (0, 0), (pad, pad), (pad, pad)))   # (B, Cin, Hp, Wp)
    x_ext = jnp.pad(x_pad.reshape(B, Cin, Sp),
                    ((0, 0), (0, 0), (margin, Se - Sp - margin)))  # (B, Cin, Se)

    # lane-dense padding-ring mask (keeps p1 exactly zero outside the valid image)
    m2d = np.zeros((Hp, Wp), np.float32)
    m2d[pad:pad + H, pad:pad + W] = 1.0
    mask_np = np.zeros((1, Se), np.float32)
    mask_np[0, margin:margin + Sp] = m2d.reshape(-1)
    mask = jnp.asarray(mask_np)

    def kernel(x_ref, mask_ref, w1_ref, b1_ref, *rest):
        dw_refs = rest[:n]
        dwb_ref, wout_ref, b2_ref, o_ref, p1_ref = rest[n:]

        xv = x_ref[0]                                              # (Cin, Se) lane-dense
        # pconv1 (1x1 conv, BN scale folded) + bias + ReLU6, padding ring zeroed,
        # stashed in an explicit VMEM scratch so every tap below is a clean vld.
        p1 = jnp.dot(w1_ref[...], xv, preferred_element_type=jnp.float32)
        p1_ref[...] = _relu6(p1 + b1_ref[...]) * mask_ref[...]     # (ex, Se)

        # MSDC: multi-scale depthwise conv as static lane-offset loads + VPU MACs,
        # BN bias + ReLU6 per scale, summed across scales (add=True). No zero-init.
        acc = None
        for s, k in enumerate(kernel_sizes):
            w_s = dw_refs[s][...]                                  # (ex, k*k), one vld
            half = k // 2
            y = None
            for dy in range(k):
                for dx in range(k):
                    off = margin + (dy - half) * Wp + (dx - half)  # static lane offset
                    tap = p1_ref[:, off:off + Sp_out]              # (ex, Sp_out)
                    t = dy * k + dx
                    term = tap * w_s[:, t:t + 1]                   # lane-broadcast MAC
                    y = term if y is None else y + term
            y = _relu6(y + dwb_ref[:, s:s + 1])
            acc = y if acc is None else acc + y                    # (ex, Sp_out)

        # pconv2 (BN scale + channel shuffle folded) fused with the skip path.
        x_crop = xv[:, margin:margin + Sp_out]                     # (Cin, Sp_out)
        if identity_skip:
            out = jnp.dot(wout_ref[...], acc, preferred_element_type=jnp.float32)
            out = out + x_crop                                     # VPU add, no eye matmul
        else:
            cat = jnp.concatenate([acc, x_crop], axis=0)           # (comb+Cin, Sp_out)
            out = jnp.dot(wout_ref[...], cat, preferred_element_type=jnp.float32)
        o_ref[0] = out + b2_ref[...]                               # lane-dense store

    in_specs = [
        pl.BlockSpec((1, Cin, Se), lambda b: (b, 0, 0)),
        pl.BlockSpec((1, Se), lambda b: (0, 0)),
        pl.BlockSpec((ex, Cin), lambda b: (0, 0)),
        pl.BlockSpec((ex, 1), lambda b: (0, 0)),
    ]
    in_specs += [pl.BlockSpec((ex, k * k), lambda b: (0, 0)) for k in kernel_sizes]
    in_specs += [
        pl.BlockSpec((ex, n), lambda b: (0, 0)),
        pl.BlockSpec(w_out.shape, lambda b: (0, 0)),
        pl.BlockSpec((Cout, 1), lambda b: (0, 0)),
    ]

    out_pad = pl.pallas_call(
        kernel,
        out_shape=jax.ShapeDtypeStruct((B, Cout, Sp_out), jnp.float32),
        grid_spec=pltpu.PrefetchScalarGridSpec(
            num_scalar_prefetch=0,
            grid=(B,),
            in_specs=in_specs,
            out_specs=pl.BlockSpec((1, Cout, Sp_out), lambda b: (b, 0, 0)),
            scratch_shapes=[pltpu.VMEM((ex, Se), jnp.float32)],
        ),
        compiler_params=pltpu.CompilerParams(
            dimension_semantics=("parallel",),
            vmem_limit_bytes=32 * 1024 * 1024),
    )(x_ext, mask, w1_cf, b1_col, *dw_cf, dwb_cf, w_out, b2_col)

    # Crop the lane padding and the zero ring (wrapper-side metadata slice); already NCHW.
    out = out_pad[:, :, :Sp].reshape(B, Cout, Hp, Wp)[:, :, pad:pad + H, pad:pad + W]
    return out


# ----------------------------- pure-JAX reference ----------------------------
def mscb_reference(x_nchw, params, kernel_sizes=(1, 3, 5)):
    x = jnp.transpose(x_nchw, (0, 2, 3, 1)).astype(jnp.float32)
    B, H, W, Cin = x.shape
    ex = params["w_p1"].shape[1]
    Cout = params["w_p2"].shape[1]
    s1, b1 = params["bn1"]
    p1 = jnp.clip(jnp.einsum("bhwc,cd->bhwd", x, params["w_p1"]) * s1 + b1, 0.0, 6.0)
    sc_dw, bi_dw = params["bn_dw"]
    dout = jnp.zeros((B, H, W, ex), jnp.float32)
    for s, k in enumerate(kernel_sizes):
        w = params["w_dw"][s].reshape(k, k, 1, ex)
        y = jax.lax.conv_general_dilated(
            p1, w, window_strides=(1, 1), padding=[(k // 2, k // 2)] * 2,
            dimension_numbers=("NHWC", "HWIO", "NHWC"), feature_group_count=ex)
        dout = dout + jnp.clip(y * sc_dw[s] + bi_dw[s], 0.0, 6.0)
    comb = ex
    g = math.gcd(comb, Cout)
    perm = np.arange(comb).reshape(g, comb // g).T.reshape(-1)
    dout = dout[..., perm]
    s2, b2 = params["bn2"]
    out = jnp.einsum("bhwc,cd->bhwd", dout, params["w_p2"]) * s2 + b2
    skip = jnp.einsum("bhwc,cd->bhwd", x, params["w_skip"]) if Cin != Cout else x
    out = out + skip
    return jnp.transpose(out, (0, 3, 1, 2))


if __name__ == "__main__":
    B, Cin, H, W = 2, 4, 16, 16
    Cout = 6  # != Cin so the fused conv1x1 skip path is exercised
    key = jax.random.PRNGKey(0)
    kx, kp = jax.random.split(key)
    x = jax.random.normal(kx, (B, Cin, H, W), jnp.float32)
    params = make_mscb_params(kp, Cin, Cout)

    out = mscb_forward(x, params)
    out = jax.block_until_ready(out)
    assert out.shape == (B, Cout, H, W)

    ref = mscb_reference(x, params)
    np.testing.assert_allclose(np.asarray(out), np.asarray(ref),
                               rtol=1e-4, atol=2e-5)
    print("KERNEL_OK")
</pallas_src>

<mosaic_0001>
module attributes {stable_mosaic.version = 11 : i64} {
  func.func @kernel(%arg0: i32, %arg1: memref<1x4x640xf32, #tpu.memory_space<vmem>>, %arg2: memref<1x640xf32, #tpu.memory_space<vmem>>, %arg3: memref<8x4xf32, #tpu.memory_space<vmem>>, %arg4: memref<8x1xf32, #tpu.memory_space<vmem>>, %arg5: memref<8x1xf32, #tpu.memory_space<vmem>>, %arg6: memref<8x9xf32, #tpu.memory_space<vmem>>, %arg7: memref<8x25xf32, #tpu.memory_space<vmem>>, %arg8: memref<8x3xf32, #tpu.memory_space<vmem>>, %arg9: memref<6x12xf32, #tpu.memory_space<vmem>>, %arg10: memref<6x1xf32, #tpu.memory_space<vmem>>, %arg11: memref<1x6x512xf32, #tpu.memory_space<vmem>>, %arg12: memref<8x640xf32, #tpu.memory_space<vmem>>) attributes {dimension_semantics = [#tpu.dimension_semantics<parallel>], iteration_bounds = array<i64: 2>, scalar_prefetch = 0 : i64, scratch_operands = 1 : i64, tpu.core_type = #tpu.core_type<tc>, window_params = [{transform_indices = @transform_0, window_bounds = array<i64: 1, 4, 640>}, {pipeline_mode = #tpu.pipeline_mode<synchronous>, transform_indices = @transform_1, window_bounds = array<i64: 1, 640>}, {pipeline_mode = #tpu.pipeline_mode<synchronous>, transform_indices = @transform_2, window_bounds = array<i64: 8, 4>}, {pipeline_mode = #tpu.pipeline_mode<synchronous>, transform_indices = @transform_3, window_bounds = array<i64: 8, 1>}, {pipeline_mode = #tpu.pipeline_mode<synchronous>, transform_indices = @transform_4, window_bounds = array<i64: 8, 1>}, {pipeline_mode = #tpu.pipeline_mode<synchronous>, transform_indices = @transform_5, window_bounds = array<i64: 8, 9>}, {pipeline_mode = #tpu.pipeline_mode<synchronous>, transform_indices = @transform_6, window_bounds = array<i64: 8, 25>}, {pipeline_mode = #tpu.pipeline_mode<synchronous>, transform_indices = @transform_7, window_bounds = array<i64: 8, 3>}, {pipeline_mode = #tpu.pipeline_mode<synchronous>, transform_indices = @transform_8, window_bounds = array<i64: 6, 12>}, {pipeline_mode = #tpu.pipeline_mode<synchronous>, transform_indices = @transform_9, window_bounds = array<i64: 6, 1>}, {transform_indices = @transform_10, window_bounds = array<i64: 1, 6, 512>}]} {
    %c0 = arith.constant 0 : index
    %c0_0 = arith.constant 0 : index
    %c0_1 = arith.constant 0 : index
    %0 = vector.load %arg1[%c0, %c0_0, %c0_1] : memref<1x4x640xf32, #tpu.memory_space<vmem>>, vector<1x4x640xf32>
    %1 = vector.shape_cast %0 : vector<1x4x640xf32> to vector<4x640xf32>
    %c0_2 = arith.constant 0 : index
    %c0_3 = arith.constant 0 : index
    %2 = vector.load %arg3[%c0_2, %c0_3] : memref<8x4xf32, #tpu.memory_space<vmem>>, vector<8x4xf32>
    %cst = arith.constant dense<0.000000e+00> : vector<8x640xf32>
    %3 = tpu.matmul %2, %1, %cst {dimension_numbers = #tpu.dot_dimension_numbers<[1], [0], [0], [1], [0, 0, 1, 1], [], []>} : vector<8x4xf32>, vector<4x640xf32>, vector<8x640xf32> -> vector<8x640xf32>
    %c0_4 = arith.constant 0 : index
    %c0_5 = arith.constant 0 : index
    %4 = vector.load %arg4[%c0_4, %c0_5] : memref<8x1xf32, #tpu.memory_space<vmem>>, vector<8x1xf32>
    %5 = vector.broadcast %4 : vector<8x1xf32> to vector<8x640xf32>
    %6 = arith.addf %3, %5 : vector<8x640xf32>
    %cst_6 = arith.constant 0.000000e+00 : f32
    %cst_7 = arith.constant 6.000000e+00 : f32
    %7 = vector.broadcast %cst_6 : f32 to vector<8x640xf32>
    %8 = arith.maximumf %7, %6 : vector<8x640xf32>
    %9 = vector.broadcast %cst_7 : f32 to vector<8x640xf32>
    %10 = arith.minimumf %9, %8 : vector<8x640xf32>
    %c0_8 = arith.constant 0 : index
    %c0_9 = arith.constant 0 : index
    %11 = vector.load %arg2[%c0_8, %c0_9] : memref<1x640xf32, #tpu.memory_space<vmem>>, vector<1x640xf32>
    %12 = vector.broadcast %11 : vector<1x640xf32> to vector<8x640xf32>
    %13 = arith.mulf %10, %12 : vector<8x640xf32>
    %c0_10 = arith.constant 0 : index
    %c0_11 = arith.constant 0 : index
    %14 = vector.load %arg12[%c0_10, %c0_11] : memref<8x640xf32, #tpu.memory_space<vmem>>, vector<8x640xf32>
    tpu.vector_store %arg12[%c0_10, %c0_11], %13 {strides = array<i32>} : memref<8x640xf32, #tpu.memory_space<vmem>>, vector<8x640xf32>,
    %c0_12 = arith.constant 0 : index
    %c0_13 = arith.constant 0 : index
    %15 = vector.load %arg5[%c0_12, %c0_13] : memref<8x1xf32, #tpu.memory_space<vmem>>, vector<8x1xf32>
    %c0_14 = arith.constant 0 : index
    %c64 = arith.constant 64 : index
    %16 = vector.load %arg12[%c0_14, %c64] : memref<8x640xf32, #tpu.memory_space<vmem>>, vector<8x512xf32>
    %17 = vector.broadcast %15 : vector<8x1xf32> to vector<8x512xf32>
    %18 = arith.mulf %16, %17 : vector<8x512xf32>
    %c0_15 = arith.constant 0 : index
    %c0_16 = arith.constant 0 : index
    %19 = vector.load %arg8[%c0_15, %c0_16] : memref<8x3xf32, #tpu.memory_space<vmem>>, vector<8x1xf32>
    %20 = vector.broadcast %19 : vector<8x1xf32> to vector<8x512xf32>
    %21 = arith.addf %18, %20 : vector<8x512xf32>
    %cst_17 = arith.constant 0.000000e+00 : f32
    %cst_18 = arith.constant 6.000000e+00 : f32
    %22 = vector.broadcast %cst_17 : f32 to vector<8x512xf32>
    %23 = arith.maximumf %22, %21 : vector<8x512xf32>
    %24 = vector.broadcast %cst_18 : f32 to vector<8x512xf32>
    %25 = arith.minimumf %24, %23 : vector<8x512xf32>
    %c0_19 = arith.constant 0 : index
    %c0_20 = arith.constant 0 : index
    %26 = vector.load %arg6[%c0_19, %c0_20] : memref<8x9xf32, #tpu.memory_space<vmem>>, vector<8x9xf32>
    %c0_21 = arith.constant 0 : index
    %c43 = arith.constant 43 : index
    %27 = vector.load %arg12[%c0_21, %c43] : memref<8x640xf32, #tpu.memory_space<vmem>>, vector<8x512xf32>
    %28 = vector.extract_strided_slice %26 {offsets = [0, 0], sizes = [8, 1], strides = [1, 1]} : vector<8x9xf32> to vector<8x1xf32>
    %29 = vector.broadcast %28 : vector<8x1xf32> to vector<8x512xf32>
    %30 = arith.mulf %27, %29 : vector<8x512xf32>
    %c0_22 = arith.constant 0 : index
    %c44 = arith.constant 44 : index
    %31 = vector.load %arg12[%c0_22, %c44] : memref<8x640xf32, #tpu.memory_space<vmem>>, vector<8x512xf32>
    %32 = vector.extract_strided_slice %26 {offsets = [0, 1], sizes = [8, 1], strides = [1, 1]} : vector<8x9xf32> to vector<8x1xf32>
    %33 = vector.broadcast %32 : vector<8x1xf32> to vector<8x512xf32>
    %34 = arith.mulf %31, %33 : vector<8x512xf32>
    %35 = arith.addf %30, %34 : vector<8x512xf32>
    %c0_23 = arith.constant 0 : index
    %c45 = arith.constant 45 : index
    %36 = vector.load %arg12[%c0_23, %c45] : memref<8x640xf32, #tpu.memory_space<vmem>>, vector<8x512xf32>
    %37 = vector.extract_strided_slice %26 {offsets = [0, 2], sizes = [8, 1], strides = [1, 1]} : vector<8x9xf32> to vector<8x1xf32>
    %38 = vector.broadcast %37 : vector<8x1xf32> to vector<8x512xf32>
    %39 = arith.mulf %36, %38 : vector<8x512xf32>
    %40 = arith.addf %35, %39 : vector<8x512xf32>
    %c0_24 = arith.constant 0 : index
    %c63 = arith.constant 63 : index
    %41 = vector.load %arg12[%c0_24, %c63] : memref<8x640xf32, #tpu.memory_space<vmem>>, vector<8x512xf32>
    %42 = vector.extract_strided_slice %26 {offsets = [0, 3], sizes = [8, 1], strides = [1, 1]} : vector<8x9xf32> to vector<8x1xf32>
    %43 = vector.broadcast %42 : vector<8x1xf32> to vector<8x512xf32>
    %44 = arith.mulf %41, %43 : vector<8x512xf32>
    %45 = arith.addf %40, %44 : vector<8x512xf32>
    %c0_25 = arith.constant 0 : index
    %c64_26 = arith.constant 64 : index
    %46 = vector.load %arg12[%c0_25, %c64_26] : memref<8x640xf32, #tpu.memory_space<vmem>>, vector<8x512xf32>
    %47 = vector.extract_strided_slice %26 {offsets = [0, 4], sizes = [8, 1], strides = [1, 1]} : vector<8x9xf32> to vector<8x1xf32>
    %48 = vector.broadcast %47 : vector<8x1xf32> to vector<8x512xf32>
    %49 = arith.mulf %46, %48 : vector<8x512xf32>
    %50 = arith.addf %45, %49 : vector<8x512xf32>
    %c0_27 = arith.constant 0 : index
    %c65 = arith.constant 65 : index
    %51 = vector.load %arg12[%c0_27, %c65] : memref<8x640xf32, #tpu.memory_space<vmem>>, vector<8x512xf32>
    %52 = vector.extract_strided_slice %26 {offsets = [0, 5], sizes = [8, 1], strides = [1, 1]} : vector<8x9xf32> to vector<8x1xf32>
    %53 = vector.broadcast %52 : vector<8x1xf32> to vector<8x512xf32>
    %54 = arith.mulf %51, %53 : vector<8x512xf32>
    %55 = arith.addf %50, %54 : vector<8x512xf32>
    %c0_28 = arith.constant 0 : index
    %c83 = arith.constant 83 : index
    %56 = vector.load %arg12[%c0_28, %c83] : memref<8x640xf32, #tpu.memory_space<vmem>>, vector<8x512xf32>
    %57 = vector.extract_strided_slice %26 {offsets = [0, 6], sizes = [8, 1], strides = [1, 1]} : vector<8x9xf32> to vector<8x1xf32>
    %58 = vector.broadcast %57 : vector<8x1xf32> to vector<8x512xf32>
    %59 = arith.mulf %56, %58 : vector<8x512xf32>
    %60 = arith.addf %55, %59 : vector<8x512xf32>
    %c0_29 = arith.constant 0 : index
    %c84 = arith.constant 84 : index
    %61 = vector.load %arg12[%c0_29, %c84] : memref<8x640xf32, #tpu.memory_space<vmem>>, vector<8x512xf32>
    %62 = vector.extract_strided_slice %26 {offsets = [0, 7], sizes = [8, 1], strides = [1, 1]} : vector<8x9xf32> to vector<8x1xf32>
    %63 = vector.broadcast %62 : vector<8x1xf32> to vector<8x512xf32>
    %64 = arith.mulf %61, %63 : vector<8x512xf32>
    %65 = arith.addf %60, %64 : vector<8x512xf32>
    %c0_30 = arith.constant 0 : index
    %c85 = arith.constant 85 : index
    %66 = vector.load %arg12[%c0_30, %c85] : memref<8x640xf32, #tpu.memory_space<vmem>>, vector<8x512xf32>
    %67 = vector.extract_strided_slice %26 {offsets = [0, 8], sizes = [8, 1], strides = [1, 1]} : vector<8x9xf32> to vector<8x1xf32>
    %68 = vector.broadcast %67 : vector<8x1xf32> to vector<8x512xf32>
    %69 = arith.mulf %66, %68 : vector<8x512xf32>
    %70 = arith.addf %65, %69 : vector<8x512xf32>
    %c0_31 = arith.constant 0 : index
    %c1 = arith.constant 1 : index
    %71 = vector.load %arg8[%c0_31, %c1] : memref<8x3xf32, #tpu.memory_space<vmem>>, vector<8x1xf32>
    %72 = vector.broadcast %71 : vector<8x1xf32> to vector<8x512xf32>
    %73 = arith.addf %70, %72 : vector<8x512xf32>
    %cst_32 = arith.constant 0.000000e+00 : f32
    %cst_33 = arith.constant 6.000000e+00 : f32
    %74 = vector.broadcast %cst_32 : f32 to vector<8x512xf32>
    %75 = arith.maximumf %74, %73 : vector<8x512xf32>
    %76 = vector.broadcast %cst_33 : f32 to vector<8x512xf32>
    %77 = arith.minimumf %76, %75 : vector<8x512xf32>
    %78 = arith.addf %25, %77 : vector<8x512xf32>
    %c0_34 = arith.constant 0 : index
    %c0_35 = arith.constant 0 : index
    %79 = vector.load %arg7[%c0_34, %c0_35] : memref<8x25xf32, #tpu.memory_space<vmem>>, vector<8x25xf32>
    %c0_36 = arith.constant 0 : index
    %c22 = arith.constant 22 : index
    %80 = vector.load %arg12[%c0_36, %c22] : memref<8x640xf32, #tpu.memory_space<vmem>>, vector<8x512xf32>
    %81 = vector.extract_strided_slice %79 {offsets = [0, 0], sizes = [8, 1], strides = [1, 1]} : vector<8x25xf32> to vector<8x1xf32>
    %82 = vector.broadcast %81 : vector<8x1xf32> to vector<8x512xf32>
    %83 = arith.mulf %80, %82 : vector<8x512xf32>
    %c0_37 = arith.constant 0 : index
    %c23 = arith.constant 23 : index
    %84 = vector.load %arg12[%c0_37, %c23] : memref<8x640xf32, #tpu.memory_space<vmem>>, vector<8x512xf32>
    %85 = vector.extract_strided_slice %79 {offsets = [0, 1], sizes = [8, 1], strides = [1, 1]} : vector<8x25xf32> to vector<8x1xf32>
    %86 = vector.broadcast %85 : vector<8x1xf32> to vector<8x512xf32>
    %87 = arith.mulf %84, %86 : vector<8x512xf32>
    %88 = arith.addf %83, %87 : vector<8x512xf32>
    %c0_38 = arith.constant 0 : index
    %c24 = arith.constant 24 : index
    %89 = vector.load %arg12[%c0_38, %c24] : memref<8x640xf32, #tpu.memory_space<vmem>>, vector<8x512xf32>
    %90 = vector.extract_strided_slice %79 {offsets = [0, 2], sizes = [8, 1], strides = [1, 1]} : vector<8x25xf32> to vector<8x1xf32>
    %91 = vector.broadcast %90 : vector<8x1xf32> to vector<8x512xf32>
    %92 = arith.mulf %89, %91 : vector<8x512xf32>
    %93 = arith.addf %88, %92 : vector<8x512xf32>
    %c0_39 = arith.constant 0 : index
    %c25 = arith.constant 25 : index
    %94 = vector.load %arg12[%c0_39, %c25] : memref<8x640xf32, #tpu.memory_space<vmem>>, vector<8x512xf32>
    %95 = vector.extract_strided_slice %79 {offsets = [0, 3], sizes = [8, 1], strides = [1, 1]} : vector<8x25xf32> to vector<8x1xf32>
    %96 = vector.broadcast %95 : vector<8x1xf32> to vector<8x512xf32>
    %97 = arith.mulf %94, %96 : vector<8x512xf32>
    %98 = arith.addf %93, %97 : vector<8x512xf32>
    %c0_40 = arith.constant 0 : index
    %c26 = arith.constant 26 : index
    %99 = vector.load %arg12[%c0_40, %c26] : memref<8x640xf32, #tpu.memory_space<vmem>>, vector<8x512xf32>
    %100 = vector.extract_strided_slice %79 {offsets = [0, 4], sizes = [8, 1], strides = [1, 1]} : vector<8x25xf32> to vector<8x1xf32>
    %101 = vector.broadcast %100 : vector<8x1xf32> to vector<8x512xf32>
    %102 = arith.mulf %99, %101 : vector<8x512xf32>
    %103 = arith.addf %98, %102 : vector<8x512xf32>
    %c0_41 = arith.constant 0 : index
    %c42 = arith.constant 42 : index
    %104 = vector.load %arg12[%c0_41, %c42] : memref<8x640xf32, #tpu.memory_space<vmem>>, vector<8x512xf32>
    %105 = vector.extract_strided_slice %79 {offsets = [0, 5], sizes = [8, 1], strides = [1, 1]} : vector<8x25xf32> to vector<8x1xf32>
    %106 = vector.broadcast %105 : vector<8x1xf32> to vector<8x512xf32>
    %107 = arith.mulf %104, %106 : vector<8x512xf32>
    %108 = arith.addf %103, %107 : vector<8x512xf32>
    %c0_42 = arith.constant 0 : index
    %c43_43 = arith.constant 43 : index
    %109 = vector.load %arg12[%c0_42, %c43_43] : memref<8x640xf32, #tpu.memory_space<vmem>>, vector<8x512xf32>
    %110 = vector.extract_strided_slice %79 {offsets = [0, 6], sizes = [8, 1], strides = [1, 1]} : vector<8x25xf32> to vector<8x1xf32>
    %111 = vector.broadcast %110 : vector<8x1xf32> to vector<8x512xf32>
    %112 = arith.mulf %109, %111 : vector<8x512xf32>
    %113 = arith.addf %108, %112 : vector<8x512xf32>
    %c0_44 = arith.constant 0 : index
    %c44_45 = arith.constant 44 : index
    %114 = vector.load %arg12[%c0_44, %c44_45] : memref<8x640xf32, #tpu.memory_space<vmem>>, vector<8x512xf32>
    %115 = vector.extract_strided_slice %79 {offsets = [0, 7], sizes = [8, 1], strides = [1, 1]} : vector<8x25xf32> to vector<8x1xf32>
    %116 = vector.broadcast %115 : vector<8x1xf32> to vector<8x512xf32>
    %117 = arith.mulf %114, %116 : vector<8x512xf32>
    %118 = arith.addf %113, %117 : vector<8x512xf32>
    %c0_46 = arith.constant 0 : index
    %c45_47 = arith.constant 45 : index
    %119 = vector.load %arg12[%c0_46, %c45_47] : memref<8x640xf32, #tpu.memory_space<vmem>>, vector<8x512xf32>
    %120 = vector.extract_strided_slice %79 {offsets = [0, 8], sizes = [8, 1], strides = [1, 1]} : vector<8x25xf32> to vector<8x1xf32>
    %121 = vector.broadcast %120 : vector<8x1xf32> to vector<8x512xf32>
    %122 = arith.mulf %119, %121 : vector<8x512xf32>
    %123 = arith.addf %118, %122 : vector<8x512xf32>
    %c0_48 = arith.constant 0 : index
    %c46 = arith.constant 46 : index
    %124 = vector.load %arg12[%c0_48, %c46] : memref<8x640xf32, #tpu.memory_space<vmem>>, vector<8x512xf32>
    %125 = vector.extract_strided_slice %79 {offsets = [0, 9], sizes = [8, 1], strides = [1, 1]} : vector<8x25xf32> to vector<8x1xf32>
    %126 = vector.broadcast %125 : vector<8x1xf32> to vector<8x512xf32>
    %127 = arith.mulf %124, %126 : vector<8x512xf32>
    %128 = arith.addf %123, %127 : vector<8x512xf32>
    %c0_49 = arith.constant 0 : index
    %c62 = arith.constant 62 : index
    %129 = vector.load %arg12[%c0_49, %c62] : memref<8x640xf32, #tpu.memory_space<vmem>>, vector<8x512xf32>
    %130 = vector.extract_strided_slice %79 {offsets = [0, 10], sizes = [8, 1], strides = [1, 1]} : vector<8x25xf32> to vector<8x1xf32>
    %131 = vector.broadcast %130 : vector<8x1xf32> to vector<8x512xf32>
    %132 = arith.mulf %129, %131 : vector<8x512xf32>
    %133 = arith.addf %128, %132 : vector<8x512xf32>
    %c0_50 = arith.constant 0 : index
    %c63_51 = arith.constant 63 : index
    %134 = vector.load %arg12[%c0_50, %c63_51] : memref<8x640xf32, #tpu.memory_space<vmem>>, vector<8x512xf32>
    %135 = vector.extract_strided_slice %79 {offsets = [0, 11], sizes = [8, 1], strides = [1, 1]} : vector<8x25xf32> to vector<8x1xf32>
    %136 = vector.broadcast %135 : vector<8x1xf32> to vector<8x512xf32>
    %137 = arith.mulf %134, %136 : vector<8x512xf32>
    %138 = arith.addf %133, %137 : vector<8x512xf32>
    %c0_52 = arith.constant 0 : index
    %c64_53 = arith.constant 64 : index
    %139 = vector.load %arg12[%c0_52, %c64_53] : memref<8x640xf32, #tpu.memory_space<vmem>>, vector<8x512xf32>
    %140 = vector.extract_strided_slice %79 {offsets = [0, 12], sizes = [8, 1], strides = [1, 1]} : vector<8x25xf32> to vector<8x1xf32>
    %141 = vector.broadcast %140 : vector<8x1xf32> to vector<8x512xf32>
    %142 = arith.mulf %139, %141 : vector<8x512xf32>
    %143 = arith.addf %138, %142 : vector<8x512xf32>
    %c0_54 = arith.constant 0 : index
    %c65_55 = arith.constant 65 : index
    %144 = vector.load %arg12[%c0_54, %c65_55] : memref<8x640xf32, #tpu.memory_space<vmem>>, vector<8x512xf32>
    %145 = vector.extract_strided_slice %79 {offsets = [0, 13], sizes = [8, 1], strides = [1, 1]} : vector<8x25xf32> to vector<8x1xf32>
    %146 = vector.broadcast %145 : vector<8x1xf32> to vector<8x512xf32>
    %147 = arith.mulf %144, %146 : vector<8x512xf32>
    %148 = arith.addf %143, %147 : vector<8x512xf32>
    %c0_56 = arith.constant 0 : index
    %c66 = arith.constant 66 : index
    %149 = vector.load %arg12[%c0_56, %c66] : memref<8x640xf32, #tpu.memory_space<vmem>>, vector<8x512xf32>
    %150 = vector.extract_strided_slice %79 {offsets = [0, 14], sizes = [8, 1], strides = [1, 1]} : vector<8x25xf32> to vector<8x1xf32>
    %151 = vector.broadcast %150 : vector<8x1xf32> to vector<8x512xf32>
    %152 = arith.mulf %149, %151 : vector<8x512xf32>
    %153 = arith.addf %148, %152 : vector<8x512xf32>
    %c0_57 = arith.constant 0 : index
    %c82 = arith.constant 82 : index
    %154 = vector.load %arg12[%c0_57, %c82] : memref<8x640xf32, #tpu.memory_space<vmem>>, vector<8x512xf32>
    %155 = vector.extract_strided_slice %79 {offsets = [0, 15], sizes = [8, 1], strides = [1, 1]} : vector<8x25xf32> to vector<8x1xf32>
    %156 = vector.broadcast %155 : vector<8x1xf32> to vector<8x512xf32>
    %157 = arith.mulf %154, %156 : vector<8x512xf32>
    %158 = arith.addf %153, %157 : vector<8x512xf32>
    %c0_58 = arith.constant 0 : index
    %c83_59 = arith.constant 83 : index
    %159 = vector.load %arg12[%c0_58, %c83_59] : memref<8x640xf32, #tpu.memory_space<vmem>>, vector<8x512xf32>
    %160 = vector.extract_strided_slice %79 {offsets = [0, 16], sizes = [8, 1], strides = [1, 1]} : vector<8x25xf32> to vector<8x1xf32>
    %161 = vector.broadcast %160 : vector<8x1xf32> to vector<8x512xf32>
    %162 = arith.mulf %159, %161 : vector<8x512xf32>
    %163 = arith.addf %158, %162 : vector<8x512xf32>
    %c0_60 = arith.constant 0 : index
    %c84_61 = arith.constant 84 : index
    %164 = vector.load %arg12[%c0_60, %c84_61] : memref<8x640xf32, #tpu.memory_space<vmem>>, vector<8x512xf32>
    %165 = vector.extract_strided_slice %79 {offsets = [0, 17], sizes = [8, 1], strides = [1, 1]} : vector<8x25xf32> to vector<8x1xf32>
    %166 = vector.broadcast %165 : vector<8x1xf32> to vector<8x512xf32>
    %167 = arith.mulf %164, %166 : vector<8x512xf32>
    %168 = arith.addf %163, %167 : vector<8x512xf32>
    %c0_62 = arith.constant 0 : index
    %c85_63 = arith.constant 85 : index
    %169 = vector.load %arg12[%c0_62, %c85_63] : memref<8x640xf32, #tpu.memory_space<vmem>>, vector<8x512xf32>
    %170 = vector.extract_strided_slice %79 {offsets = [0, 18], sizes = [8, 1], strides = [1, 1]} : vector<8x25xf32> to vector<8x1xf32>
    %171 = vector.broadcast %170 : vector<8x1xf32> to vector<8x512xf32>
    %172 = arith.mulf %169, %171 : vector<8x512xf32>
    %173 = arith.addf %168, %172 : vector<8x512xf32>
    %c0_64 = arith.constant 0 : index
    %c86 = arith.constant 86 : index
    %174 = vector.load %arg12[%c0_64, %c86] : memref<8x640xf32, #tpu.memory_space<vmem>>, vector<8x512xf32>
    %175 = vector.extract_strided_slice %79 {offsets = [0, 19], sizes = [8, 1], strides = [1, 1]} : vector<8x25xf32> to vector<8x1xf32>
    %176 = vector.broadcast %175 : vector<8x1xf32> to vector<8x512xf32>
    %177 = arith.mulf %174, %176 : vector<8x512xf32>
    %178 = arith.addf %173, %177 : vector<8x512xf32>
    %c0_65 = arith.constant 0 : index
    %c102 = arith.constant 102 : index
    %179 = vector.load %arg12[%c0_65, %c102] : memref<8x640xf32, #tpu.memory_space<vmem>>, vector<8x512xf32>
    %180 = vector.extract_strided_slice %79 {offsets = [0, 20], sizes = [8, 1], strides = [1, 1]} : vector<8x25xf32> to vector<8x1xf32>
    %181 = vector.broadcast %180 : vector<8x1xf32> to vector<8x512xf32>
    %182 = arith.mulf %179, %181 : vector<8x512xf32>
    %183 = arith.addf %178, %182 : vector<8x512xf32>
    %c0_66 = arith.constant 0 : index
    %c103 = arith.constant 103 : index
    %184 = vector.load %arg12[%c0_66, %c103] : memref<8x640xf32, #tpu.memory_space<vmem>>, vector<8x512xf32>
    %185 = vector.extract_strided_slice %79 {offsets = [0, 21], sizes = [8, 1], strides = [1, 1]} : vector<8x25xf32> to vector<8x1xf32>
    %186 = vector.broadcast %185 : vector<8x1xf32> to vector<8x512xf32>
    %187 = arith.mulf %184, %186 : vector<8x512xf32>
    %188 = arith.addf %183, %187 : vector<8x512xf32>
    %c0_67 = arith.constant 0 : index
    %c104 = arith.constant 104 : index
    %189 = vector.load %arg12[%c0_67, %c104] : memref<8x640xf32, #tpu.memory_space<vmem>>, vector<8x512xf32>
    %190 = vector.extract_strided_slice %79 {offsets = [0, 22], sizes = [8, 1], strides = [1, 1]} : vector<8x25xf32> to vector<8x1xf32>
    %191 = vector.broadcast %190 : vector<8x1xf32> to vector<8x512xf32>
    %192 = arith.mulf %189, %191 : vector<8x512xf32>
    %193 = arith.addf %188, %192 : vector<8x512xf32>
    %c0_68 = arith.constant 0 : index
    %c105 = arith.constant 105 : index
    %194 = vector.load %arg12[%c0_68, %c105] : memref<8x640xf32, #tpu.memory_space<vmem>>, vector<8x512xf32>
    %195 = vector.extract_strided_slice %79 {offsets = [0, 23], sizes = [8, 1], strides = [1, 1]} : vector<8x25xf32> to vector<8x1xf32>
    %196 = vector.broadcast %195 : vector<8x1xf32> to vector<8x512xf32>
    %197 = arith.mulf %194, %196 : vector<8x512xf32>
    %198 = arith.addf %193, %197 : vector<8x512xf32>
    %c0_69 = arith.constant 0 : index
    %c106 = arith.constant 106 : index
    %199 = vector.load %arg12[%c0_69, %c106] : memref<8x640xf32, #tpu.memory_space<vmem>>, vector<8x512xf32>
    %200 = vector.extract_strided_slice %79 {offsets = [0, 24], sizes = [8, 1], strides = [1, 1]} : vector<8x25xf32> to vector<8x1xf32>
    %201 = vector.broadcast %200 : vector<8x1xf32> to vector<8x512xf32>
    %202 = arith.mulf %199, %201 : vector<8x512xf32>
    %203 = arith.addf %198, %202 : vector<8x512xf32>
    %c0_70 = arith.constant 0 : index
    %c2 = arith.constant 2 : index
    %204 = vector.load %arg8[%c0_70, %c2] : memref<8x3xf32, #tpu.memory_space<vmem>>, vector<8x1xf32>
    %205 = vector.broadcast %204 : vector<8x1xf32> to vector<8x512xf32>
    %206 = arith.addf %203, %205 : vector<8x512xf32>
    %cst_71 = arith.constant 0.000000e+00 : f32
    %cst_72 = arith.constant 6.000000e+00 : f32
    %207 = vector.broadcast %cst_71 : f32 to vector<8x512xf32>
    %208 = arith.maximumf %207, %206 : vector<8x512xf32>
    %209 = vector.broadcast %cst_72 : f32 to vector<8x512xf32>
    %210 = arith.minimumf %209, %208 : vector<8x512xf32>
    %211 = arith.addf %78, %210 : vector<8x512xf32>
    %212 = vector.extract_strided_slice %1 {offsets = [0, 64], sizes = [4, 512], strides = [1, 1]} : vector<4x640xf32> to vector<4x512xf32>
    %213 = tpu.concatenate %211, %212 in 0 : vector<8x512xf32>, vector<4x512xf32> -> vector<12x512xf32>
    %c0_73 = arith.constant 0 : index
    %c0_74 = arith.constant 0 : index
    %214 = vector.load %arg9[%c0_73, %c0_74] : memref<6x12xf32, #tpu.memory_space<vmem>>, vector<6x12xf32>
    %cst_75 = arith.constant dense<0.000000e+00> : vector<6x512xf32>
    %215 = tpu.matmul %214, %213, %cst_75 {dimension_numbers = #tpu.dot_dimension_numbers<[1], [0], [0], [1], [0, 0, 1, 1], [], []>} : vector<6x12xf32>, vector<12x512xf32>, vector<6x512xf32> -> vector<6x512xf32>
    %c0_76 = arith.constant 0 : index
    %c0_77 = arith.constant 0 : index
    %216 = vector.load %arg10[%c0_76, %c0_77] : memref<6x1xf32, #tpu.memory_space<vmem>>, vector<6x1xf32>
    %217 = vector.broadcast %216 : vector<6x1xf32> to vector<6x512xf32>
    %218 = arith.addf %215, %217 : vector<6x512xf32>
    %c0_78 = arith.constant 0 : index
    %c0_79 = arith.constant 0 : index
    %c0_80 = arith.constant 0 : index
    %219 = vector.load %arg11[%c0_78, %c0_79, %c0_80] : memref<1x6x512xf32, #tpu.memory_space<vmem>>, vector<1x6x512xf32>
    %220 = vector.shape_cast %219 : vector<1x6x512xf32> to vector<6x512xf32>
    %221 = vector.shape_cast %218 : vector<6x512xf32> to vector<1x6x512xf32>
    tpu.vector_store %arg11[%c0_78, %c0_79, %c0_80], %221 {strides = array<i32>} : memref<1x6x512xf32, #tpu.memory_space<vmem>>, vector<1x6x512xf32>,
    return
  }
  func.func @transform_0(%arg0: i32) -> (i32, i32, i32) {
    %c0_i32 = arith.constant 0 : i32
    %c0_i32_0 = arith.constant 0 : i32
    %c0_i32_1 = arith.constant 0 : i32
    return %arg0, %c0_i32, %c0_i32_0 : i32, i32, i32
  }
  func.func @transform_1(%arg0: i32) -> (i32, i32) {
    %c0_i32 = arith.constant 0 : i32
    %c0_i32_0 = arith.constant 0 : i32
    %c0_i32_1 = arith.constant 0 : i32
    return %c0_i32, %c0_i32_0 : i32, i32
  }
  func.func @transform_2(%arg0: i32) -> (i32, i32) {
    %c0_i32 = arith.constant 0 : i32
    %c0_i32_0 = arith.constant 0 : i32
    %c0_i32_1 = arith.constant 0 : i32
    return %c0_i32, %c0_i32_0 : i32, i32
  }
  func.func @transform_3(%arg0: i32) -> (i32, i32) {
    %c0_i32 = arith.constant 0 : i32
    %c0_i32_0 = arith.constant 0 : i32
    %c0_i32_1 = arith.constant 0 : i32
    return %c0_i32, %c0_i32_0 : i32, i32
  }
  func.func @transform_4(%arg0: i32) -> (i32, i32) {
    %c0_i32 = arith.constant 0 : i32
    %c0_i32_0 = arith.constant 0 : i32
    %c0_i32_1 = arith.constant 0 : i32
    return %c0_i32, %c0_i32_0 : i32, i32
  }
  func.func @transform_5(%arg0: i32) -> (i32, i32) {
    %c0_i32 = arith.constant 0 : i32
    %c0_i32_0 = arith.constant 0 : i32
    %c0_i32_1 = arith.constant 0 : i32
    return %c0_i32, %c0_i32_0 : i32, i32
  }
  func.func @transform_6(%arg0: i32) -> (i32, i32) {
    %c0_i32 = arith.constant 0 : i32
    %c0_i32_0 = arith.constant 0 : i32
    %c0_i32_1 = arith.constant 0 : i32
    return %c0_i32, %c0_i32_0 : i32, i32
  }
  func.func @transform_7(%arg0: i32) -> (i32, i32) {
    %c0_i32 = arith.constant 0 : i32
    %c0_i32_0 = arith.constant 0 : i32
    %c0_i32_1 = arith.constant 0 : i32
    return %c0_i32, %c0_i32_0 : i32, i32
  }
  func.func @transform_8(%arg0: i32) -> (i32, i32) {
    %c0_i32 = arith.constant 0 : i32
    %c0_i32_0 = arith.constant 0 : i32
    %c0_i32_1 = arith.constant 0 : i32
    return %c0_i32, %c0_i32_0 : i32, i32
  }
  func.func @transform_9(%arg0: i32) -> (i32, i32) {
    %c0_i32 = arith.constant 0 : i32
    %c0_i32_0 = arith.constant 0 : i32
    %c0_i32_1 = arith.constant 0 : i32
    return %c0_i32, %c0_i32_0 : i32, i32
  }
  func.func @transform_10(%arg0: i32) -> (i32, i32, i32) {
    %c0_i32 = arith.constant 0 : i32
    %c0_i32_0 = arith.constant 0 : i32
    %c0_i32_1 = arith.constant 0 : i32
    return %arg0, %c0_i32, %c0_i32_0 : i32, i32, i32
  }
}

</mosaic_0001>

<bundles_post_ra>
// kernel: tpu_custom_call.1
= control target key start
LH: loop header
LB: loop body
LE: loop exit
PB: predicated region body
PF: predicated region fallthrough
CT: control target
= control target key end

     0   :  { %15 = vsyncpa [#allocation4], 0  ;;  %s2663_s13 = smov 0   ;;  %s4035_s0 = inlined_call_operand.vmem [shape: f32[2,4,640], index: 0, kind: input, shape index: {}]   ;;  %s4036_s1 = inlined_call_operand.hbm [shape: f32[1,640], index: 1, kind: input, shape index: {}]   ;;  %s4037_s2 = inlined_call_operand.vmem [shape: f32[8,4], index: 2, kind: input, shape index: {}]   ;;  %s4038_s3 = inlined_call_operand.vmem [shape: f32[8,1], index: 3, kind: input, shape index: {}]   ;;  %s4039_s4 = inlined_call_operand.vmem [shape: f32[8,1], index: 4, kind: input, shape index: {}]   ;;  %s4040_s5 = inlined_call_operand.vmem [shape: f32[8,9], index: 5, kind: input, shape index: {}]   ;;  %s4041_s6 = inlined_call_operand.vmem [shape: f32[8,25], index: 6, kind: input, shape index: {}]   ;;  %s4042_s7 = inlined_call_operand.vmem [shape: f32[8,3], index: 7, kind: input, shape index: {}]   ;;  %s4043_s8 = inlined_call_operand.vmem [shape: f32[6,12], index: 8, kind: input, shape index: {}]   ;;  %s4044_s9 = inlined_call_operand.vmem [shape: f32[6,1], index: 9, kind: input, shape index: {}]   ;;  %s4045_s10 = inlined_call_operand.vmem [shape: f32[2,6,512], index: 10, kind: output, shape index: {}]  }
   0x1 LB: > { %s2669_s14 = sadd.s32 4294967295, %s2551_s13   ;;  %p2330_p0 = scmp.ge.s32.totalorder %s2551_s13, 1  ;;  %s2551_s13 = sphi %s2663_s13, %s21_s13  }
   0x2   : > { %p267_p1 = scmp.lt.s32.totalorder %s2551_s13, 3  ;;  %p4046_p3 = scmp.eq.s32.totalorder %s2669_s14, 0 }
   0x3   : > { %s2553_s16 = smov [#allocation3]   ;;  %s2513_s21 = scalar_lea.hbm %s4036_s1, 80 }
   0x4   : > { %p2673_p2 = pnand %p2330_p0, %p267_p1  ;;  %s280_s17 = sshll.u32 %s2553_s16, 4  ;;  %s281_s17 = int_to_ptr.vmem [resolvable:$true] %s280_s17 }
   0x5   : > { %p2514_p6 = scmp.ne.s32.totalorder %s4036_s1, %s2513_s21  ;;  %p2520_p10 = scmp.lt.u32.totalorder %s2513_s21, %s4036_s1 }
   0x6   : > { %s4079_s15 = scalar_select %p2673_p2, 1, 0 }
   0x7   : > { %p2379_p4 = pneg %p2673_p2 }
   0x9   : > { %p2682_p5 = pnand %p4046_p3, %p2379_p4 }
   0xb   : > { %p2515_p7 = pneg %p2682_p5 }
   0xd   : > { %p2516_p8 = pnand %p2515_p7, %p2514_p6 }
   0xf   : > { %p2517_p9 = pneg %p2516_p8 }
  0x11   : > { %p2522_p11 = pnand %p2520_p10, %p2517_p9 }
  0x13   : > { %2525 = shalt.err (!%p2522_p11)
}
  0x14   : > { %s2526_s26 = scalar_lea.vmem %s281_s17, 80  ;;  %s2533_s27 = scalar_lea.vmem %s281_s17, 96 }
  0x15   : > { %p2527_p12 = scmp.ne.s32.totalorder %s281_s17, %s2526_s26  ;;  %p2534_p1 = scmp.lt.s32.totalorder %s281_s17, %s281_s17 }
  0x16   : > { %p2535_p4 = scmp.lt.s32.totalorder %s2533_s27, %s2526_s26 }
  0x17   : > { %p2529_p13 = pnand %p2527_p12, %p2515_p7 }
  0x18   : > { %p2536_p3 = por %p2535_p4, %p2534_p1 }
  0x19   : > { %p2530_p0 = pneg %p2529_p13 }
  0x1b   : > { %p2537_p2 = pnand %p2536_p3, %p2530_p0 }
  0x1d   : > { %2540 = shalt.err (!%p2537_p2)
}
  0x1e   : > { %2382 = dma.hbm_to_vmem [thread:$0]  (!%p2682_p5), %s4036_s1, 80, %s281_s17, [#allocation4]  }
  0x1f   : > { %p4081_p6 = scmp.ne.s32.totalorder %s4079_s15, 0 }
  0x21   : > { %325 = sbr.rel (%p4081_p6) target bundleno = 1205 (0x4b5), region = 60 }
  0x28   : > { %p4082_p8 = scmp.eq.s32.totalorder %s2669_s14, 0 }
  0x2a   : > { %2546 = dma.done.wait (%p4082_p8), [#allocation4], 80   ;;  %p4083_p7 = pmov %p4082_p8 }
  0x2b   : > { %v627_v0 = vlaneseq  ;;  %p363_p3 = scmp.lt.s32.totalorder %s2669_s14, 1  ;;  %v4049_v1 = vmov 2   ;;  %v2555_v2 = vmov 0.0   ;;  %v2556_v4 = vmov 1   ;;  %v2726_v6 = vld [vmem:[%s4041_s6] sm:$0xff]  ;;  %s2581_s24 = smov 126  }
  0x2c   : > { %2548 = vsyncadd (%p4083_p7), [#allocation4], 4294967216  ;;  %2449 = vset.pattern.permute.xlu1 %v4049_v1  ;;  %467 = vmatprep.mubr.f32.mxu0 %v2555_v2  ;;  %v2729_v8 = vld [vmem:[#allocation3] sm:$0x1f]  ;;  %vm392_vm0 = vcmask 1043456   ;;  %vm388_vm1 = vcmask 31744  }
  0x2d   : > { %s4167_s14 = smov (!%p363_p3, %s2669_s14), 1  ;;  %538 = vmatprep.mubr.f32.mxu1 %v2555_v2  ;;  %v2713_v3 = vshrl.u32 %v627_v0, 7  ;;  %2448 = vset.pattern.permute.xlu0 %v2556_v4  ;;  %v376_v14 = vld [vmem:[%s4037_s2] sm:$0xff]  ;;  %v2557_v17 = vmov 3   ;;  %vm2558_vm2 = vmmov 0   ;;  %v2559_v18 = vmov 5  }
  0x2e   : > { %s2374_s30 = smul.u32 20, %s4167_s14  ;;  %1121 = vperm.xlu1 %2449, %v2726_v6   ;;  %1083 = vperm.xlu0 %2448, %v2726_v6   ;;  %v2560_v19 = vmov 4   ;;  %v2561_v20 = vmov 8   ;;  %v2562_v21 = vmov 6   ;;  %v2563_v22 = vmov 11   ;;  %v699_v28 = vld [vmem:[%s4040_s5] sm:$0xff] }
  0x2f   : > { %v645_v5 = vsub.s32 4, %v2713_v3  ;;  %v2564_v23 = vmov 7   ;;  %v2565_v24 = vmov 14   ;;  %v2566_v25 = vmov 9   ;;  %v377_v35 = vld [vmem:[%s4038_s3] sm:$0xff]  ;;  %s2582_s25 = smov 127  }
  0x30   : > { %s2721_s15 = scalar_lea.vmem %s4035_s0, %s2374_s30  ;;  %v2567_v26 = vmov 16   ;;  %v2568_v27 = vmov 10   ;;  %v2569_v29 = vmov 12   ;;  %v2570_v30 = vmov 19   ;;  %s2583_s26 = smov 124  }
  0x31   : > { %v373_v7 = vld [vmem:[%s2721_s15] sm:$0xff]  ;;  %v2733_v9 = vld [vmem:[%s2721_s15 + $0x8] sm:$0xff]  ;;  %v2736_v10 = vrot.slane %v2729_v8, %v645_v5  ;;  %v2746_v13 = vld [vmem:[%s2721_s15 + $0x10] sm:$0xf]  ;;  %v2571_v31 = vmov 13   ;;  %v2572_v32 = vmov 15  }
  0x32   : > { %4084 = vst [vmem:[#allocation6_spill] sm:$0xff] %v2733_v9  ;;  %v2738_v11 = vcombine.high %v373_v7, %v373_v7  ;;  %v2742_v12 = vcombine.high %v2733_v9, %v2733_v9  ;;  %4087 = vst [vmem:[#allocation9_spill] sm:$0xff] %v2746_v13  ;;  %2450 = vset.pattern.permute.xlu1 %v2557_v17  ;;  %2452 = vset.pattern.permute.xlu0 %v2559_v18  ;;  %v2573_v33 = vmov 22   ;;  %v2574_v34 = vmov 24   ;;  %s2584_s27 = smov 125   ;;  %s2585_s28 = smov 107  }
  0x33   : > { %1159 = vperm.xlu1 %2450, %v2726_v6   ;;  %1237 = vperm.xlu0 %2452, %v2726_v6   ;;  %v4048_v36 = vmov 0   ;;  %v2576_v37 = vmov 17   ;;  %v2577_v38 = vmov 18   ;;  %v2578_v39 = vmov 20   ;;  %s2586_s29 = smov 108   ;;  %s2587_s30 = smov 105  }
  0x34   : > { %4085 = vst [vmem:[#allocation7_spill] sm:$0xff] %v2738_v11  ;;  %4086 = vst [vmem:[#allocation8_spill] sm:$0xff] %v2742_v12  ;;  %2338 = vmatprep.subr.msk.mxu0 %vm392_vm0, %v2738_v11  ;;  %2341 = vmatprep.subr.msk.mxu1 %vm392_vm0, %v2742_v12  ;;  %v2579_v40 = vmov 21   ;;  %v2580_v41 = vmov 23   ;;  %v629_v54 = vsub.s32 0, %v2713_v3  ;;  %v637_v58 = vsub.s32 2, %v2713_v3 }
  0x35   : > { %2339 = vmatpush1.msk.msra.mxu0 %vm392_vm0, %v373_v7  ;;  %2342 = vmatpush1.msk.msra.mxu1 %vm392_vm0, %v2733_v9  ;;  %s2588_s11 = smov 106   ;;  %s2589_s12 = smov 88   ;;  %vm734_vm3 = vcmask 1039360   ;;  %vm773_vm4 = vcmask 1031168   ;;  %vm1182_vm5 = vcmask 1022976   ;;  %vm1221_vm6 = vcmask 1014784  }
  0x36   : > { %2340 = vmatmul.mubr.msk.f32.vlgmr.msra.gmra.mrb[0].mxu0 %vm388_vm1, %v376_v14  ;;  %2343 = vmatmul.mubr.msk.f32.vlgmr.msra.gmra.mrb[0].mxu1 %vm388_vm1, %v376_v14  ;;  %v630_v0 = vrot.slane %v2729_v8, %v629_v54  ;;  %s2590_s16 = smov 104   ;;  %s2591_s17 = smov 86   ;;  %vm812_vm7 = vcmask 883712   ;;  %vm851_vm8 = vcmask 875520   ;;  %vm890_vm9 = vcmask 867328  }
  0x37   : > { %2357 = vmatprep.subr.mxu0 %v2555_v2  ;;  %2359 = vmatprep.mubr.msk.f32.mxu0 %vm2558_vm2, %v2555_v2  ;;  %s2592_s18 = smov 87   ;;  %s2593_s19 = smov 84   ;;  %vm1374_vm10 = vcmask 859136   ;;  %vm1413_vm11 = vcmask 850944   ;;  %vm929_vm12 = vcmask 719872   ;;  %vm968_vm13 = vcmask 711680  }
  0x38   : > { %2358 = vmatpush3.msk.msra.mxu0 %vm392_vm0, %v2746_v13  ;;  %2451 = vset.pattern.permute.xlu1 %v2560_v19  ;;  %s2594_s20 = smov 85   ;;  %s2595_s21 = smov 68   ;;  %vm1683_vm14 = vcmask 547840   ;;  %vm1007_vm15 = vcmask 703488   ;;  %vm1605_vm2 = vcmask 687104  }
  0x39   : > { %2179 = vmatprep.mubr.f32.mxu1 %v2555_v2  ;;  %1198 = vperm.xlu1 %2451, %v2726_v6   ;;  %s2596_s22 = smov 67   ;;  %s2597_s23 = smov 66  }
  0x3a   : > { %2360 = vmatmul.mubr.msk.f32.vlgmr.msra.gmra.mrb[2].mxu0 %vm388_vm1, %v376_v14  ;;  %2455 = vset.pattern.permute.xlu0 %v2561_v20  ;;  %vm1566_vm1 = vcmask 695296  }
  0x3b   : > { %2250 = vmatprep.mubr.f32.mxu0 %v2555_v2  ;;  %1351 = vperm.xlu0 %2455, %v2726_v6  }
  0x3d   : > { %2453 = vset.pattern.permute.xlu1 %v2562_v21 }
  0x3e   : > { %1275 = vperm.xlu1 %2453, %v2726_v6  }
  0x3f   : > { %2458 = vset.pattern.permute.xlu0 %v2563_v22 }
  0x40   : > { %1467 = vperm.xlu0 %2458, %v2726_v6  }
  0x42   : > { %2454 = vset.pattern.permute.xlu1 %v2564_v23 }
  0x43   : > { %1313 = vperm.xlu1 %2454, %v2726_v6  }
  0x44   : > { %2461 = vset.pattern.permute.xlu0 %v2565_v24 }
  0x45   : > { %1582 = vperm.xlu0 %2461, %v2726_v6  }
  0x47   : > { %2456 = vset.pattern.permute.xlu1 %v2566_v25 }
  0x48   : > { %1390 = vperm.xlu1 %2456, %v2726_v6  }
  0x49   : > { %2464 = vset.pattern.permute.xlu0 %v2567_v26 }
  0x4a   : > { %1660 = vperm.xlu0 %2464, %v2726_v6  }
  0x4c   : > { %2457 = vset.pattern.permute.xlu1 %v2568_v27 }
  0x4d   : > { %1429 = vperm.xlu1 %2457, %v2726_v6  }
  0x4e   : > { %2467 = vset.pattern.permute.xlu0 %v2557_v17 }
  0x4f   : > { %789 = vperm.xlu0 %2467, %v699_v28  }
  0x51   : > { %2459 = vset.pattern.permute.xlu1 %v2569_v29 }
  0x52   : > { %1505 = vperm.xlu1 %2459, %v2726_v6  }
  0x53   : > { %2470 = vset.pattern.permute.xlu0 %v2570_v30 }
  0x54   : > { %1777 = vperm.xlu0 %2470, %v2726_v6  }
  0x56   : > { %2460 = vset.pattern.permute.xlu1 %v2571_v31 }
  0x57   : > { %1543 = vperm.xlu1 %2460, %v2726_v6  }
  0x58   : > { %2473 = vset.pattern.permute.xlu0 %v2562_v21 }
  0x59   : > { %906 = vperm.xlu0 %2473, %v699_v28  }
  0x5b   : > { %2462 = vset.pattern.permute.xlu1 %v2572_v32 }
  0x5c   : > { %1621 = vperm.xlu1 %2462, %v2726_v6  }
  0x5d   : > { %2476 = vset.pattern.permute.xlu0 %v2573_v33 }
  0x5e   : > { %1894 = vperm.xlu0 %2476, %v2726_v6  }
  0x60   : > { %2463 = vset.pattern.permute.xlu1 %v2556_v4 }
  0x61   : > { %711 = vperm.xlu1 %2463, %v699_v28  }
  0x62   : > { %2479 = vset.pattern.permute.xlu0 %v2574_v34 }
  0x63   : > { %1972 = vperm.xlu0 %2479, %v2726_v6  }
  0x65   : > { %2465 = vset.pattern.permute.xlu1 %v4049_v1 }
  0x66   : > { %750 = vperm.xlu1 %2465, %v699_v28  }
  0x67   : > { %2480 = vset.pattern.permute.xlu0 %v4048_v36 }
  0x68   : > { %380 = vperm.xlu0 %2480, %v377_v35  }
  0x6a   : > { %2466 = vset.pattern.permute.xlu1 %v2576_v37 }
  0x6b   : > { %1699 = vperm.xlu1 %2466, %v2726_v6  }
  0x6c   : > { %702 = vperm.xlu0 %2480, %v699_v28  }
  0x6f   : > { %2468 = vset.pattern.permute.xlu1 %v2577_v38 }
  0x70   : > { %1738 = vperm.xlu1 %2468, %v2726_v6  }
  0x74   : > { %2469 = vset.pattern.permute.xlu1 %v2560_v19 }
  0x75   : > { %828 = vperm.xlu1 %2469, %v699_v28  }
  0x79   : > { %2471 = vset.pattern.permute.xlu1 %v2559_v18 }
  0x7a   : > { %867 = vperm.xlu1 %2471, %v699_v28  }
  0x7e   : > { %2472 = vset.pattern.permute.xlu1 %v2578_v39 }
  0x7f   : > { %1816 = vperm.xlu1 %2472, %v2726_v6  }
  0x83   : > { %2474 = vset.pattern.permute.xlu1 %v2579_v40 }
  0x84   : > { %1855 = vperm.xlu1 %2474, %v2726_v6  }
  0x88   : > { %2475 = vset.pattern.permute.xlu1 %v2564_v23 }
  0x89   : > { %945 = vperm.xlu1 %2475, %v699_v28  }
  0x8d   : > { %2477 = vset.pattern.permute.xlu1 %v2561_v20 }
  0x8e   : > { %984 = vperm.xlu1 %2477, %v699_v28  }
  0x92   : > { %2478 = vset.pattern.permute.xlu1 %v2580_v41 }
  0x93   : > { %1933 = vperm.xlu1 %2478, %v2726_v6  }
  0x97   : > { %2481 = vset.pattern.permute.xlu1 %v4048_v36 }
  0x98   : > { %1074 = vperm.xlu1 %2481, %v2726_v6   ;;  %v638_v6 = vrot.slane %v2729_v8, %v637_v58 }
  0x9c   : > { %2482 = vset.pattern.permute.xlu1 %v2556_v4 }
  0xad   : > { %v2807_v42 = vpop.permute.xlu0 %1083  ;;  %v2827_v52 = vpop.permute.xlu1 %1121 }
  0xb2   : > { %v2809_v43 = vpop.permute.xlu0 %1237  ;;  %v2832_v55 = vpop.permute.xlu1 %1159 }
  0xb8   : > { %v2846_v19 = vpop.permute.xlu1 %1198 }
  0xba   : > { %v2811_v44 = vpop.permute.xlu0 %1351 }
  0xbd   : > { %v2861_v27 = vpop.permute.xlu1 %1275 }
  0xbf   : > { %v2813_v45 = vpop.permute.xlu0 %1467 }
  0xc2   : > { %v2873_v31 = vpop.permute.xlu1 %1313 }
  0xc4   : > { %v2815_v46 = vpop.permute.xlu0 %1582 }
  0xc7   : > { %v2883_v34 = vpop.permute.xlu1 %1390 }
  0xc9   : > { %v2817_v47 = vpop.permute.xlu0 %1660 }
  0xcc   : > { %v2895_v40 = vpop.permute.xlu1 %1429 }
  0xce   : > { %v2819_v48 = vpop.permute.xlu0 %789 }
  0xd3   : > { %v2821_v49 = vpop.permute.xlu0 %1777 }
  0xd8   : > { %v2823_v50 = vpop.permute.xlu0 %906 }
  0xdd   : > { %v2825_v51 = vpop.permute.xlu0 %1894 }
  0xe2   : > { %v2829_v53 = vpop.permute.xlu0 %1972 }
  0xe3   : > { %4088 = vst [vmem:[#allocation10_spill] sm:$0xff] %v2829_v53 }
  0xe7   : > { %v2834_v56 = vpop.permute.xlu0 %380 }
 0x109   : > { %v469_v57 = vpop.f32.mrb[0].mxu0  ;;  %v540_v60 = vpop.f32.mrb[0].mxu1 }
 0x10a   : > { %v470_v59 = vadd.f32 %v469_v57, %v2834_v56  ;;  %v2838_v61 = vpop.f32.mrb[1].mxu0  ;;  %v541_v62 = vadd.f32 %v540_v60, %v2834_v56  ;;  %v2841_v63 = vpop.f32.mrb[1].mxu1 }
 0x10b   : > { %v2905_v57 = vpop.permute.xlu1 %1505 }
 0x10c   : > { %v615_v2 = vmax.f32 %v470_v59, 0.0  ;;  %v617_v4 = vmax.f32 %v541_v62, 0.0 }
 0x10d   : > { %v611_v5 = vpop.f32.mrb[2].mxu0 }
 0x10e   : > { %v620_v7 = vmin.f32 %v615_v2, 6.0  ;;  %v612_v14 = vadd.f32 %v611_v5, %v2834_v56  ;;  %v2361_v17 = vpop.f32.mrb[3].mxu0  ;;  %v622_v18 = vmin.f32 %v617_v4, 6.0  ;;  %v472_v2 = vadd.f32 %v2838_v61, %v2834_v56 }
 0x10f   : > { %v543_v17 = vadd.f32 %v2841_v63, %v2834_v56 }
 0x110   : > { %v2848_v20 = vmul.f32 %v630_v0, %v620_v7  ;;  %v619_v21 = vmax.f32 %v612_v14, 0.0  ;;  %v2850_v22 = vmul.f32 %v638_v6, %v622_v18  ;;  %v2917_v0 = vpop.permute.xlu1 %1543  ;;  %v633_v6 = vsub.s32 1, %v2713_v3 }
 0x111   : > { %v616_v14 = vmax.f32 %v472_v2, 0.0 }
 0x112   : > { %v624_v23 = vmin.f32 %v619_v21, 6.0  ;;  %v1124_v24 = vmul.f32 %v2827_v52, %v2848_v20  ;;  %v1086_v25 = vmul.f32 %v2807_v42, %v2848_v20  ;;  %v1126_v28 = vmul.f32 %v2827_v52, %v2850_v22 }
 0x113   : > { %v1088_v29 = vmul.f32 %v2807_v42, %v2850_v22  ;;  %v1162_v30 = vmul.f32 %v2832_v55, %v2848_v20  ;;  %v1203_v32 = vmul.f32 %v2846_v19, %v2850_v22  ;;  %v1164_v33 = vmul.f32 %v2832_v55, %v2850_v22 }
 0x114   : > { %v2857_v26 = vmul.f32 %v2736_v10, %v624_v23  ;;  %1134 = vrot.lane.b32.xlu0 %v1124_v24, %s2581_s24  ;;  %1096 = vrot.lane.b32.xlu1 %v1086_v25, %s2582_s25  ;;  %v1201_v10 = vmul.f32 %v2846_v19, %v2848_v20  ;;  %v1278_v35 = vmul.f32 %v2861_v27, %v2848_v20  ;;  %v2930_v7 = vpop.permute.xlu1 %1621  ;;  %v641_v23 = vsub.s32 3, %v2713_v3 }
 0x115   : > { %v1240_v37 = vmul.f32 %v2809_v43, %v2848_v20  ;;  %v1280_v38 = vmul.f32 %v2861_v27, %v2850_v22  ;;  %v1242_v39 = vmul.f32 %v2809_v43, %v2850_v22  ;;  %v1354_v41 = vmul.f32 %v2811_v44, %v2848_v20 }
 0x116   : > { %v1316_v54 = vmul.f32 %v2873_v31, %v2848_v20  ;;  %v1356_v58 = vmul.f32 %v2811_v44, %v2850_v22  ;;  %v1318_v59 = vmul.f32 %v2873_v31, %v2850_v22  ;;  %v1432_v60 = vmul.f32 %v2895_v40, %v2848_v20 }
 0x117   : > { %v1393_v62 = vmul.f32 %v2883_v34, %v2848_v20  ;;  %v1434_v4 = vmul.f32 %v2895_v40, %v2850_v22  ;;  %v1395_v5 = vmul.f32 %v2883_v34, %v2850_v22  ;;  %v1510_v61 = vmul.f32 %v2905_v57, %v2850_v22 }
 0x118   : > { %1138 = vrot.lane.b32.xlu0 %v1126_v28, %s2581_s24  ;;  %1100 = vrot.lane.b32.xlu1 %v1088_v29, %s2582_s25  ;;  %v1470_v18 = vmul.f32 %v2813_v45, %v2848_v20  ;;  %v634_v21 = vrot.slane %v2729_v8, %v633_v6  ;;  %v621_v24 = vmin.f32 %v616_v14, 6.0  ;;  %v618_v25 = vmax.f32 %v543_v17, 0.0  ;;  %v2946_v28 = vpop.permute.xlu1 %711 }
 0x119   : > { %v1585_v56 = vmul.f32 %v2815_v46, %v2848_v20  ;;  %v1472_v63 = vmul.f32 %v2813_v45, %v2850_v22  ;;  %v642_v29 = vrot.slane %v2729_v8, %v641_v23 }
 0x11a   : > { %v623_v3 = vmin.f32 %v618_v25, 6.0 }
 0x11c   : > { %1211 = vrot.lane.b32.xlu0 %v1201_v10, %s2583_s26  ;;  %1172 = vrot.lane.b32.xlu1 %v1162_v30, %s2584_s27  ;;  %v2951_v10 = vmul.f32 %v634_v21, %v621_v24  ;;  %v1587_v30 = vmul.f32 %v2815_v46, %v2850_v22 }
 0x11e   : > { %v1087_v8 = vmul.f32 %v2807_v42, %v2951_v10  ;;  %v1241_v2 = vmul.f32 %v2809_v43, %v2951_v10  ;;  %v1394_v25 = vmul.f32 %v2883_v34, %v2951_v10 }
 0x120   : > { %1215 = vrot.lane.b32.xlu0 %v1203_v32, %s2583_s26  ;;  %1176 = vrot.lane.b32.xlu1 %v1164_v33, %s2584_s27  ;;  %v1508_v32 = vmul.f32 %v2905_v57, %v2848_v20  ;;  %v2959_v33 = vpop.permute.xlu1 %750 }
 0x124   : > { %1288 = vrot.lane.b32.xlu0 %v1278_v35, %s2585_s28  ;;  %1250 = vrot.lane.b32.xlu1 %v1240_v37, %s2586_s29  ;;  %v2961_v35 = vmul.f32 %v642_v29, %v623_v3  ;;  %v1546_v37 = vmul.f32 %v2917_v0, %v2848_v20 }
 0x126   : > { %v1243_v6 = vmul.f32 %v2809_v43, %v2961_v35  ;;  %v1127_v14 = vmul.f32 %v2827_v52, %v2961_v35  ;;  %v1319_v21 = vmul.f32 %v2873_v31, %v2961_v35  ;;  %v1204_v23 = vmul.f32 %v2846_v19, %v2961_v35 }
 0x127   : > { %v1396_v29 = vmul.f32 %v2883_v34, %v2961_v35  ;;  %v1281_v3 = vmul.f32 %v2861_v27, %v2961_v35 }
 0x128   : > { %1292 = vrot.lane.b32.xlu0 %v1280_v38, %s2585_s28  ;;  %1254 = vrot.lane.b32.xlu1 %v1242_v39, %s2586_s29  ;;  %v1089_v38 = vmul.f32 %v2807_v42, %v2961_v35  ;;  %v1548_v39 = vmul.f32 %v2917_v0, %v2850_v22 }
 0x12c   : > { %1364 = vrot.lane.b32.xlu0 %v1354_v41, %s2587_s30  ;;  %1326 = vrot.lane.b32.xlu1 %v1316_v54, %s2588_s11  ;;  %v2973_v41 = vpop.permute.xlu1 %1699  ;;  %v1163_v54 = vmul.f32 %v2832_v55, %v2951_v10 }
 0x130   : > { %1368 = vrot.lane.b32.xlu0 %v1356_v58, %s2587_s30  ;;  %1330 = vrot.lane.b32.xlu1 %v1318_v59, %s2588_s11  ;;  %v1624_v58 = vmul.f32 %v2930_v7, %v2848_v20  ;;  %v2983_v59 = vpop.permute.xlu1 %1738 }
 0x134   : > { %1442 = vrot.lane.b32.xlu0 %v1432_v60, %s2589_s12  ;;  %1403 = vrot.lane.b32.xlu1 %v1393_v62, %s2590_s16  ;;  %v1165_v60 = vmul.f32 %v2832_v55, %v2961_v35  ;;  %v1626_v62 = vmul.f32 %v2930_v7, %v2850_v22 }
 0x138   : > { %1446 = vrot.lane.b32.xlu0 %v1434_v4, %s2589_s12  ;;  %1407 = vrot.lane.b32.xlu1 %v1395_v5, %s2590_s16  ;;  %v1125_v4 = vmul.f32 %v2827_v52, %v2951_v10  ;;  %v2995_v5 = vpop.permute.xlu1 %828 }
 0x13c   : > { %1522 = vrot.lane.b32.xlu0 %v1510_v61, %s2591_s17  ;;  %1480 = vrot.lane.b32.xlu1 %v1470_v18, %s2592_s18  ;;  %v3005_v17 = vpop.permute.xlu1 %867  ;;  %v1317_v61 = vmul.f32 %v2873_v31, %v2951_v10  ;;  %v1202_v18 = vmul.f32 %v2846_v19, %v2951_v10 }
 0x140   : > { %1595 = vrot.lane.b32.xlu0 %v1585_v56, %s2593_s19  ;;  %1484 = vrot.lane.b32.xlu1 %v1472_v63, %s2592_s18  ;;  %v3017_v24 = vpop.permute.xlu1 %1816  ;;  %v1279_v56 = vmul.f32 %v2861_v27, %v2951_v10 }
 0x144   : > { %1599 = vrot.lane.b32.xlu0 %v1587_v30, %s2593_s19  ;;  %1518 = vrot.lane.b32.xlu1 %v1508_v32, %s2591_s17  ;;  %v3027_v63 = vpop.permute.xlu1 %1855  ;;  %v1471_v30 = vmul.f32 %v2813_v45, %v2951_v10  ;;  %v1355_v32 = vmul.f32 %v2811_v44, %v2951_v10 }
 0x148   : > { %1098 = vrot.lane.b32.xlu0 %v1087_v8, %s2582_s25  ;;  %1556 = vrot.lane.b32.xlu1 %v1546_v37, %s2594_s20  ;;  %v3039_v8 = vpop.permute.xlu1 %945  ;;  %v1473_v37 = vmul.f32 %v2813_v45, %v2961_v35 }
 0x14c   : > { %1102 = vrot.lane.b32.xlu0 %v1089_v38, %s2582_s25  ;;  %1560 = vrot.lane.b32.xlu1 %v1548_v39, %s2594_s20  ;;  %v1357_v38 = vmul.f32 %v2811_v44, %v2961_v35  ;;  %v3049_v39 = vpop.permute.xlu1 %984 }
 0x14d   : > { %4089 = vst [vmem:[#allocation11_spill] sm:$0xff] %v3049_v39 }
 0x150   : > { %1174 = vrot.lane.b32.xlu0 %v1163_v54, %s2584_s27  ;;  %1634 = vrot.lane.b32.xlu1 %v1624_v58, %s2595_s21  ;;  %v1547_v54 = vmul.f32 %v2917_v0, %v2951_v10  ;;  %v1433_v58 = vmul.f32 %v2895_v40, %v2951_v10 }
 0x154   : > { %1178 = vrot.lane.b32.xlu0 %v1165_v60, %s2584_s27  ;;  %1638 = vrot.lane.b32.xlu1 %v1626_v62, %s2595_s21  ;;  %v1549_v60 = vmul.f32 %v2917_v0, %v2961_v35  ;;  %v1435_v62 = vmul.f32 %v2895_v40, %v2961_v35 }
 0x158   : > { %1252 = vrot.lane.b32.xlu0 %v1241_v2, %s2586_s29  ;;  %1136 = vrot.lane.b32.xlu1 %v1125_v4, %s2581_s24  ;;  %v3061_v2 = vpop.permute.xlu1 %1933  ;;  %v1625_v4 = vmul.f32 %v2930_v7, %v2951_v10 }
 0x159   : > { %4090 = vst [vmem:[#allocation12_spill] sm:$0xff] %v3061_v2 }
 0x15c   : > { %1256 = vrot.lane.b32.xlu0 %v1243_v6, %s2586_s29  ;;  %1140 = vrot.lane.b32.xlu1 %v1127_v14, %s2581_s24  ;;  %v1509_v6 = vmul.f32 %v2905_v57, %v2951_v10  ;;  %v3071_v14 = vpop.permute.xlu0 %702 }
 0x15d   : > { %4091 = vst [vmem:[#allocation13_spill] sm:$0xff] %v3071_v14 }
 0x160   : > { %1328 = vrot.lane.b32.xlu0 %v1317_v61, %s2588_s11  ;;  %1213 = vrot.lane.b32.xlu1 %v1202_v18, %s2583_s26  ;;  %v3073_v61 = vpop.permute.xlu1 %1074  ;;  %v1128_v18 = vmul.f32 %v2827_v52, %v2857_v26 }
 0x164   : > { %1332 = vrot.lane.b32.xlu0 %v1319_v21, %s2588_s11  ;;  %1217 = vrot.lane.b32.xlu1 %v1204_v23, %s2583_s26  ;;  %v1511_v21 = vmul.f32 %v2905_v57, %v2961_v35 }
 0x168   : > { %1405 = vrot.lane.b32.xlu0 %v1394_v25, %s2590_s16  ;;  %1290 = vrot.lane.b32.xlu1 %v1279_v56, %s2585_s28  ;;  %v1205_v56 = vmul.f32 %v2846_v19, %v2857_v26 }
 0x16c   : > { %1409 = vrot.lane.b32.xlu0 %v1396_v29, %s2590_s16  ;;  %1294 = vrot.lane.b32.xlu1 %v1281_v3, %s2585_s28  ;;  %v1586_v29 = vmul.f32 %v2815_v46, %v2951_v10 }
 0x170   : > { %1482 = vrot.lane.b32.xlu0 %v1471_v30, %s2592_s18  ;;  %1366 = vrot.lane.b32.xlu1 %v1355_v32, %s2587_s30  ;;  %v1282_v30 = vmul.f32 %v2861_v27, %v2857_v26  ;;  %v1588_v32 = vmul.f32 %v2815_v46, %v2961_v35 }
 0x174   : > { %1486 = vrot.lane.b32.xlu0 %v1473_v37, %s2592_s18  ;;  %1370 = vrot.lane.b32.xlu1 %v1357_v38, %s2587_s30  ;;  %v1358_v38 = vmul.f32 %v2811_v44, %v2857_v26 }
 0x178   : > { %1558 = vrot.lane.b32.xlu0 %v1547_v54, %s2594_s20  ;;  %1444 = vrot.lane.b32.xlu1 %v1433_v58, %s2589_s12  ;;  %v1090_v54 = vmul.f32 %v2807_v42, %v2857_v26 }
 0x17c   : > { %1562 = vrot.lane.b32.xlu0 %v1549_v60, %s2594_s20  ;;  %1448 = vrot.lane.b32.xlu1 %v1435_v62, %s2589_s12  ;;  %v1436_v60 = vmul.f32 %v2895_v40, %v2857_v26  ;;  %v1166_v62 = vmul.f32 %v2832_v55, %v2857_v26 }
 0x180   : > { %1636 = vrot.lane.b32.xlu0 %v1625_v4, %s2595_s21  ;;  %1520 = vrot.lane.b32.xlu1 %v1509_v6, %s2591_s17  ;;  %v1512_v4 = vmul.f32 %v2905_v57, %v2857_v26  ;;  %v1244_v6 = vmul.f32 %v2809_v43, %v2857_v26 }
 0x184   : > { %1142 = vrot.lane.b32.xlu0 %v1128_v18, %s2581_s24  ;;  %1524 = vrot.lane.b32.xlu1 %v1511_v21, %s2591_s17  ;;  %v1589_v18 = vmul.f32 %v2815_v46, %v2857_v26  ;;  %v1320_v21 = vmul.f32 %v2873_v31, %v2857_v26 }
 0x186   : > { %v3081_v23 = vpop.permute.xlu0 %1134  ;;  %v3083_v25 = vpop.permute.xlu1 %1096 }
 0x188   : > { %1219 = vrot.lane.b32.xlu0 %v1205_v56, %s2583_s26  ;;  %1597 = vrot.lane.b32.xlu1 %v1586_v29, %s2593_s19  ;;  %v1627_v56 = vmul.f32 %v2930_v7, %v2961_v35  ;;  %v1397_v29 = vmul.f32 %v2883_v34, %v2857_v26  ;;  %s2600_s26 = smov 48  }
 0x18a   : > { %v3091_v52 = vpop.permute.xlu0 %1138  ;;  %v3093_v3 = vpop.permute.xlu1 %1100 }
 0x18c   : > { %1296 = vrot.lane.b32.xlu0 %v1282_v30, %s2585_s28  ;;  %1601 = vrot.lane.b32.xlu1 %v1588_v32, %s2593_s19  ;;  %v1474_v30 = vmul.f32 %v2813_v45, %v2857_v26  ;;  %v714_v32 = vmul.f32 %v2946_v28, %v2848_v20 }
 0x18e   : > { %v3101_v19 = vpop.permute.xlu0 %1211  ;;  %v3103_v37 = vpop.permute.xlu1 %1172 }
 0x190   : > { %1372 = vrot.lane.b32.xlu0 %v1358_v38, %s2587_s30  ;;  %1104 = vrot.lane.b32.xlu1 %v1090_v54, %s2582_s25  ;;  %v1550_v54 = vmul.f32 %v2917_v0, %v2857_v26  ;;  %s2602_s30 = smov 46  }
 0x192   : > { %v3111_v27 = vpop.permute.xlu0 %1215  ;;  %v3113_v58 = vpop.permute.xlu1 %1176 }
 0x194   : > { %1450 = vrot.lane.b32.xlu0 %v1436_v60, %s2589_s12  ;;  %1180 = vrot.lane.b32.xlu1 %v1166_v62, %s2584_s27  ;;  %v716_v60 = vmul.f32 %v2946_v28, %v2850_v22  ;;  %s2601_s27 = smov 47  }
 0x196   : > { %v3121_v44 = vpop.permute.xlu0 %1288  ;;  %v3123_v42 = vpop.permute.xlu1 %1250 }
 0x198   : > { %1526 = vrot.lane.b32.xlu0 %v1512_v4, %s2591_s17  ;;  %1258 = vrot.lane.b32.xlu1 %v1244_v6, %s2586_s29  ;;  %v1628_v4 = vmul.f32 %v2930_v7, %v2857_v26  ;;  %v718_v6 = vmul.f32 %v2946_v28, %v2857_v26 }
 0x19a   : > { %v3131_v40 = vpop.permute.xlu0 %1292  ;;  %v3133_v55 = vpop.permute.xlu1 %1254 }
 0x19c   : > { %1603 = vrot.lane.b32.xlu0 %v1589_v18, %s2593_s19  ;;  %1334 = vrot.lane.b32.xlu1 %v1320_v21, %s2588_s11  ;;  %v715_v21 = vmul.f32 %v2946_v28, %v2951_v10  ;;  %s2606_s19 = smov 42  }
 0x19e   : > { %v3141_v57 = vpop.permute.xlu0 %1364  ;;  %v3143_v43 = vpop.permute.xlu1 %1326 }
 0x19f   : > { %4092 = vst [vmem:[#allocation14_spill] sm:$0xff] %v3141_v57  ;;  %v1821_v57 = vmul.f32 %v3017_v24, %v2850_v22 }
 0x1a0   : > { %1640 = vrot.lane.b32.xlu0 %v1627_v56, %s2595_s21  ;;  %1411 = vrot.lane.b32.xlu1 %v1397_v29, %s2590_s16  ;;  %v1664_v56 = vmul.f32 %v2817_v47, %v2951_v10 }
 0x1a2   : > { %v3151_v46 = vpop.permute.xlu0 %1368  ;;  %v3153_v31 = vpop.permute.xlu1 %1330 }
 0x1a4   : > { %1488 = vrot.lane.b32.xlu1 %v1474_v30, %s2592_s18  ;;  %724 = vrot.lane.b32.xlu0 %v714_v32, %s2582_s25  ;;  %v717_v30 = vmul.f32 %v2946_v28, %v2961_v35  ;;  %v1666_v32 = vmul.f32 %v2817_v47, %v2961_v35 }
 0x1a6   : > { %v3161_v38 = vpop.permute.xlu0 %1442  ;;  %v3163_v34 = vpop.permute.xlu1 %1403 }
 0x1a7   : > { %4093 = vst [vmem:[#allocation15_spill] sm:$0xff] %v3161_v38  ;;  %4094 = vst [vmem:[#allocation16_spill] sm:$0xff] %v3163_v34 }
 0x1a8   : > { %1564 = vrot.lane.b32.xlu1 %v1550_v54, %s2594_s20  ;;  %728 = vrot.lane.b32.xlu0 %v716_v60, %s2582_s25 }
 0x1aa   : > { %v3171_v45 = vpop.permute.xlu0 %1446  ;;  %v3173_v62 = vpop.permute.xlu1 %1407 }
 0x1ab   : > { %4095 = vst [vmem:[#allocation17_spill] sm:$0xff] %v3171_v45 }
 0x1ac   : > { %1642 = vrot.lane.b32.xlu1 %v1628_v4, %s2595_s21  ;;  %732 = vrot.lane.b32.xlu0 %v718_v6, %s2582_s25  ;;  %v1663_v4 = vmul.f32 %v2817_v47, %v2848_v20  ;;  %v753_v6 = vmul.f32 %v2959_v33, %v2848_v20 }
 0x1ae   : > { %v3181_v0 = vpop.permute.xlu0 %1522  ;;  %v3183_v18 = vpop.permute.xlu1 %1480 }
 0x1af   : > { %4096 = vst [vmem:[#allocation18_spill] sm:$0xff] %v3181_v0  ;;  %4097 = vst [vmem:[#allocation19_spill] sm:$0xff] %v3183_v18 }
 0x1b0   : > { %726 = vrot.lane.b32.xlu1 %v715_v21, %s2582_s25  ;;  %1675 = vrot.lane.b32.xlu0 %v1664_v56, %s2596_s22  ;;  %v1665_v56 = vmul.f32 %v2817_v47, %v2850_v22 }
 0x1b2   : > { %v3190_v7 = vpop.permute.xlu0 %1595  ;;  %v3192_v29 = vpop.permute.xlu1 %1484 }
 0x1b3   : > { %4098 = vst [vmem:[#allocation20_spill] sm:$0xff] %v3190_v7  ;;  %4099 = vst [vmem:[#allocation21_spill] sm:$0xff] %v3192_v29 }
 0x1b4   : > { %730 = vrot.lane.b32.xlu1 %v717_v30, %s2582_s25  ;;  %1679 = vrot.lane.b32.xlu0 %v1666_v32, %s2596_s22  ;;  %v755_v30 = vmul.f32 %v2959_v33, %v2850_v22  ;;  %s2599_s25 = smov 64  }
 0x1b6   : > { %v3199_v54 = vpop.permute.xlu0 %1599  ;;  %v3201_v60 = vpop.permute.xlu1 %1518 }
 0x1b7   : > { %4100 = vst [vmem:[#allocation22_spill] sm:$0xff] %v3199_v54  ;;  %4101 = vst [vmem:[#allocation23_spill] sm:$0xff] %v3201_v60 }
 0x1b8   : > { %1673 = vrot.lane.b32.xlu1 %v1663_v4, %s2596_s22  ;;  %763 = vrot.lane.b32.xlu0 %v753_v6, %s2581_s24  ;;  %v1667_v4 = vmul.f32 %v2817_v47, %v2857_v26  ;;  %v757_v6 = vmul.f32 %v2959_v33, %v2857_v26 }
 0x1ba   : > { %v3208_v28 = vpop.permute.xlu0 %1098  ;;  %v3210_v21 = vpop.permute.xlu1 %1556 }
 0x1bb   : > { %4102 = vst [vmem:[#allocation24_spill] sm:$0xff] %v3210_v21 }
 0x1bc   : > { %1677 = vrot.lane.b32.xlu1 %v1665_v56, %s2596_s22  ;;  %767 = vrot.lane.b32.xlu0 %v755_v30, %s2581_s24  ;;  %v754_v56 = vmul.f32 %v2959_v33, %v2951_v10  ;;  %v1703_v30 = vmul.f32 %v2973_v41, %v2951_v10 }
 0x1be   : > { %v3217_v32 = vpop.permute.xlu0 %1102  ;;  %v3219_v16 = vpop.permute.xlu1 %1560 }
 0x1bf   : > { %4103 = vst [vmem:[#allocation25_spill] sm:$0xff] %v3219_v16 }
 0x1c0   : > { %1681 = vrot.lane.b32.xlu1 %v1667_v4, %s2596_s22  ;;  %771 = vrot.lane.b32.xlu0 %v757_v6, %s2581_s24  ;;  %v756_v4 = vmul.f32 %v2959_v33, %v2961_v35  ;;  %v1705_v6 = vmul.f32 %v2973_v41, %v2961_v35 }
 0x1c2   : > { %v3226_v15 = vpop.permute.xlu0 %1174  ;;  %v3228_v36 = vpop.permute.xlu1 %1634 }
 0x1c3   : > { %4104 = vst [vmem:[#allocation26_spill] sm:$0xff] %v3228_v36 }
 0x1c4   : > { %765 = vrot.lane.b32.xlu1 %v754_v56, %s2581_s24  ;;  %1714 = vrot.lane.b32.xlu0 %v1703_v30, %s2597_s23  ;;  %v1702_v56 = vmul.f32 %v2973_v41, %v2848_v20  ;;  %v792_v30 = vmul.f32 %v2819_v48, %v2848_v20 }
 0x1c6   : > { %v3235_v47 = vpop.permute.xlu0 %1178  ;;  %v3237_v1 = vpop.permute.xlu1 %1638 }
 0x1c7   : > { %4105 = vst [vmem:[#allocation27_spill] sm:$0xff] %v3237_v1 }
 0x1c8   : > { %769 = vrot.lane.b32.xlu1 %v756_v4, %s2581_s24  ;;  %1718 = vrot.lane.b32.xlu0 %v1705_v6, %s2597_s23  ;;  %v1704_v4 = vmul.f32 %v2973_v41, %v2850_v22  ;;  %v794_v6 = vmul.f32 %v2819_v48, %v2850_v22  ;;  %s2598_s24 = smov 65  }
 0x1ca   : > { %v3244_v12 = vpop.permute.xlu0 %1252  ;;  %v3246_v13 = vpop.permute.xlu1 %1136 }
 0x1cc   : > { %1712 = vrot.lane.b32.xlu1 %v1702_v56, %s2597_s23  ;;  %802 = vrot.lane.b32.xlu0 %v792_v30, %s2586_s29  ;;  %v1706_v56 = vmul.f32 %v2973_v41, %v2857_v26  ;;  %v796_v30 = vmul.f32 %v2819_v48, %v2857_v26 }
 0x1ce   : > { %v3253_v33 = vpop.permute.xlu0 %1256  ;;  %v3255_v11 = vpop.permute.xlu1 %1140 }
 0x1d0   : > { %1716 = vrot.lane.b32.xlu1 %v1704_v4, %s2597_s23  ;;  %806 = vrot.lane.b32.xlu0 %v794_v6, %s2586_s29  ;;  %v793_v4 = vmul.f32 %v2819_v48, %v2951_v10  ;;  %v1742_v6 = vmul.f32 %v2983_v59, %v2951_v10 }
 0x1d2   : > { %v3262_v9 = vpop.permute.xlu0 %1328  ;;  %v3264_v36 = vpop.permute.xlu1 %1213 }
 0x1d4   : > { %1720 = vrot.lane.b32.xlu1 %v1706_v56, %s2597_s23  ;;  %810 = vrot.lane.b32.xlu0 %v796_v30, %s2586_s29  ;;  %v795_v56 = vmul.f32 %v2819_v48, %v2961_v35  ;;  %v1744_v30 = vmul.f32 %v2983_v59, %v2961_v35  ;;  %s2354_s23 = sshll.u32 %s4167_s14, 5 }
 0x1d6   : > { %v3271_v53 = vpop.permute.xlu0 %1332  ;;  %v3273_v7 = vpop.permute.xlu1 %1217 }
 0x1d8   : > { %804 = vrot.lane.b32.xlu1 %v793_v4, %s2586_s29  ;;  %1753 = vrot.lane.b32.xlu0 %v1742_v6, %s2598_s24  ;;  %v1741_v4 = vmul.f32 %v2983_v59, %v2848_v20  ;;  %v831_v6 = vmul.f32 %v2995_v5, %v2848_v20 }
 0x1da   : > { %v3280_v41 = vpop.permute.xlu0 %1405  ;;  %v3282_v21 = vpop.permute.xlu1 %1290 }
 0x1dc   : > { %808 = vrot.lane.b32.xlu1 %v795_v56, %s2586_s29  ;;  %1757 = vrot.lane.b32.xlu0 %v1744_v30, %s2598_s24  ;;  %v1743_v56 = vmul.f32 %v2983_v59, %v2850_v22  ;;  %v833_v30 = vmul.f32 %v2995_v5, %v2850_v22 }
 0x1de   : > { %v3289_v60 = vpop.permute.xlu0 %1409  ;;  %v3291_v2 = vpop.permute.xlu1 %1294 }
 0x1e0   : > { %1751 = vrot.lane.b32.xlu1 %v1741_v4, %s2598_s24  ;;  %841 = vrot.lane.b32.xlu0 %v831_v6, %s2585_s28  ;;  %v1745_v4 = vmul.f32 %v2983_v59, %v2857_v26  ;;  %v835_v6 = vmul.f32 %v2995_v5, %v2857_v26 }
 0x1e2   : > { %v3298_v48 = vpop.permute.xlu0 %1482  ;;  %v3300_v1 = vpop.permute.xlu1 %1366 }
 0x1e3   : > { %4106 = vst [vmem:[#allocation28_spill] sm:$0xff] %v3298_v48 }
 0x1e4   : > { %1755 = vrot.lane.b32.xlu1 %v1743_v56, %s2598_s24  ;;  %845 = vrot.lane.b32.xlu0 %v833_v30, %s2585_s28  ;;  %v832_v56 = vmul.f32 %v2995_v5, %v2951_v10  ;;  %v1781_v30 = vmul.f32 %v2821_v49, %v2951_v10 }
 0x1e6   : > { %v3307_v18 = vpop.permute.xlu0 %1486  ;;  %v3309_v54 = vpop.permute.xlu1 %1370 }
 0x1e7   : > { %4107 = vst [vmem:[#allocation29_spill] sm:$0xff] %v3307_v18 }
 0x1e8   : > { %1759 = vrot.lane.b32.xlu1 %v1745_v4, %s2598_s24  ;;  %849 = vrot.lane.b32.xlu0 %v835_v6, %s2585_s28  ;;  %v834_v6 = vmul.f32 %v2995_v5, %v2961_v35 }
 0x1ea   : > { %v3316_v16 = vpop.permute.xlu0 %1558  ;;  %v3318_v38 = vpop.permute.xlu1 %1444 }
 0x1eb   : > { %4108 = vst [vmem:[#allocation30_spill] sm:$0xff] %v3316_v16  ;;  %4109 = vst [vmem:[#allocation31_spill] sm:$0xff] %v3318_v38  ;;  %v1783_v16 = vmul.f32 %v2821_v49, %v2961_v35  ;;  %v913_v38 = vmul.f32 %v2823_v50, %v2857_v26 }
 0x1ec   : > { %843 = vrot.lane.b32.xlu1 %v832_v56, %s2585_s28  ;;  %1792 = vrot.lane.b32.xlu0 %v1781_v30, %s2599_s25  ;;  %v1780_v30 = vmul.f32 %v2821_v49, %v2848_v20 }
 0x1ee   : > { %v3326_v59 = vpop.permute.xlu0 %1562  ;;  %v3328_v4 = vpop.permute.xlu1 %1448 }
 0x1ef   : > { %4110 = vst [vmem:[#allocation32_spill] sm:$0xff] %v3326_v59  ;;  %4111 = vst [vmem:[#allocation33_spill] sm:$0xff] %v3328_v4  ;;  %v870_v59 = vmul.f32 %v3005_v17, %v2848_v20  ;;  %v911_v4 = vmul.f32 %v2823_v50, %v2850_v22 }
 0x1f0   : > { %847 = vrot.lane.b32.xlu1 %v834_v6, %s2585_s28  ;;  %1796 = vrot.lane.b32.xlu0 %v1783_v16, %s2599_s25  ;;  %v1782_v16 = vmul.f32 %v2821_v49, %v2850_v22  ;;  %v872_v6 = vmul.f32 %v3005_v17, %v2850_v22 }
 0x1f2   : > { %v3336_v34 = vpop.permute.xlu0 %1636  ;;  %v3338_v56 = vpop.permute.xlu1 %1520 }
 0x1f3   : > { %4112 = vst [vmem:[#allocation34_spill] sm:$0xff] %v3336_v34  ;;  %4113 = vst [vmem:[#allocation35_spill] sm:$0xff] %v3338_v56 }
 0x1f4   : > { %1790 = vrot.lane.b32.xlu1 %v1780_v30, %s2599_s25  ;;  %880 = vrot.lane.b32.xlu0 %v870_v59, %s2588_s11  ;;  %v1784_v59 = vmul.f32 %v2821_v49, %v2857_v26  ;;  %v874_v30 = vmul.f32 %v3005_v17, %v2857_v26 }
 0x1f6   : > { %v1143_v5 = vpop.permute.xlu0 %1142  ;;  %v3346_v0 = vpop.permute.xlu1 %1524 }
 0x1f7   : > { %4114 = vst [vmem:[#allocation36_spill] sm:$0xff] %v3346_v0 }
 0x1f8   : > { %1794 = vrot.lane.b32.xlu1 %v1782_v16, %s2599_s25  ;;  %884 = vrot.lane.b32.xlu0 %v872_v6, %s2588_s11  ;;  %v871_v16 = vmul.f32 %v3005_v17, %v2951_v10  ;;  %v1820_v6 = vmul.f32 %v3017_v24, %v2951_v10 }
 0x1fa   : > { %v3354_v34 = vpop.permute.xlu0 %1219  ;;  %v3356_v56 = vpop.permute.xlu1 %1597 }
 0x1fb   : > { %4115 = vst [vmem:[#allocation37_spill] sm:$0xff] %v3356_v56 }
 0x1fc   : > { %1798 = vrot.lane.b32.xlu1 %v1784_v59, %s2599_s25  ;;  %888 = vrot.lane.b32.xlu0 %v874_v30, %s2588_s11  ;;  %v873_v30 = vmul.f32 %v3005_v17, %v2961_v35  ;;  %v1081_v17 = vmul.f32 %v3073_v61, %v2857_v26 }
 0x1fe   : > { %v3364_v0 = vpop.permute.xlu0 %1296  ;;  %v3366_v48 = vpop.permute.xlu1 %1601 }
 0x1ff   : > { %4116 = vst [vmem:[#allocation38_spill] sm:$0xff] %v3366_v48  ;;  %v1822_v48 = vmul.f32 %v3017_v24, %v2961_v35 }
 0x200   : > { %882 = vrot.lane.b32.xlu1 %v871_v16, %s2588_s11  ;;  %1831 = vrot.lane.b32.xlu0 %v1820_v6, %s2600_s26  ;;  %v1819_v16 = vmul.f32 %v3017_v24, %v2848_v20  ;;  %v909_v6 = vmul.f32 %v2823_v50, %v2848_v20 }
 0x202   : > { %v3374_v49 = vpop.permute.xlu0 %1372  ;;  %v1105_v59 = vpop.permute.xlu1 %1104 }
 0x203   : > { %v1109_v39 = vsel %vm734_vm3, %v3217_v32, %v1105_v59 }
 0x204   : > { %886 = vrot.lane.b32.xlu1 %v873_v30, %s2588_s11  ;;  %1835 = vrot.lane.b32.xlu0 %v1822_v48, %s2600_s26  ;;  %v1080_v48 = vmul.f32 %v3073_v61, %v2961_v35  ;;  %v1119_v30 = vadd.f32 %v1105_v59, %v1081_v17  ;;  %s2603_s11 = smov 45  }
 0x206   : > { %v3382_v56 = vpop.permute.xlu0 %1450  ;;  %v1181_v29 = vpop.permute.xlu1 %1180 }
 0x207   : > { %4117 = vst [vmem:[#allocation39_spill] sm:$0xff] %v3382_v56  ;;  %v1118_v56 = vadd.f32 %v1109_v39, %v1080_v48 }
 0x208   : > { %1829 = vrot.lane.b32.xlu1 %v1819_v16, %s2600_s26  ;;  %919 = vrot.lane.b32.xlu0 %v909_v6, %s2589_s12  ;;  %v1147_v16 = vsel %vm773_vm4, %v3255_v11, %v1143_v5  ;;  %v1157_v6 = vadd.f32 %v1143_v5, %v1119_v30  ;;  %v1858_v30 = vmul.f32 %v3027_v63, %v2848_v20 }
 0x209   : > { %v1156_v39 = vadd.f32 %v1147_v16, %v1118_v56  ;;  %v1107_v56 = vsel %vm734_vm3, %v3208_v28, %v3093_v3 }
 0x20a   : > { %v3396_v14 = vpop.permute.xlu0 %1526  ;;  %v1259_v18 = vpop.permute.xlu1 %1258 }
 0x20b   : > { %4118 = vst [vmem:[#allocation40_spill] sm:$0xff] %v3396_v14  ;;  %v1823_v14 = vmul.f32 %v3017_v24, %v2857_v26  ;;  %v910_v24 = vmul.f32 %v2823_v50, %v2951_v10  ;;  %v1263_v45 = vsel %vm812_vm7, %v3253_v33, %v1259_v18 }
 0x20c   : > { %1833 = vrot.lane.b32.xlu1 %v1821_v57, %s2600_s26  ;;  %923 = vrot.lane.b32.xlu0 %v911_v4, %s2589_s12  ;;  %v1186_v57 = vsel %vm1182_vm5, %v3235_v47, %v1181_v29  ;;  %v1196_v4 = vadd.f32 %v1181_v29, %v1157_v6  ;;  %v1108_v29 = vsel %vm734_vm3, %v3093_v3, %v3217_v32 }
 0x20d   : > { %v1195_v16 = vadd.f32 %v1186_v57, %v1156_v39  ;;  %v1145_v6 = vsel %vm773_vm4, %v3246_v13, %v3091_v52  ;;  %v912_v39 = vmul.f32 %v2823_v50, %v2961_v35  ;;  %v1860_v3 = vmul.f32 %v3027_v63, %v2850_v22 }
 0x20e   : > { %v3406_v59 = vpop.permute.xlu0 %1603  ;;  %v3408_v17 = vpop.permute.xlu1 %1334  ;;  %v1146_v32 = vsel %vm773_vm4, %v3091_v52, %v3255_v11 }
 0x20f   : > { %4119 = vst [vmem:[#allocation41_spill] sm:$0xff] %v3406_v59  ;;  %v1235_v59 = vadd.f32 %v3354_v34, %v1196_v4  ;;  %v1077_v4 = vmul.f32 %v3073_v61, %v2848_v20 }
 0x210   : > { %1837 = vrot.lane.b32.xlu1 %v1823_v14, %s2600_s26  ;;  %927 = vrot.lane.b32.xlu0 %v913_v38, %s2589_s12  ;;  %v1078_v14 = vmul.f32 %v3073_v61, %v2951_v10  ;;  %v1079_v38 = vmul.f32 %v3073_v61, %v2850_v22  ;;  %v1859_v61 = vmul.f32 %v3027_v63, %v2951_v10  ;;  %s372_s26 = scalar_lea.vmem %s4045_s10, %s2354_s23 }
 0x211   : > { %v1273_v11 = vadd.f32 %v1259_v18, %v1235_v59  ;;  %v1106_v18 = vsel %vm734_vm3, %v3083_v25, %v3208_v28  ;;  %v1224_v25 = vsel %vm1221_vm6, %v3111_v27, %v3273_v7 }
 0x212   : > { %v3418_v5 = vpop.permute.xlu0 %1640  ;;  %v3420_v48 = vpop.permute.xlu1 %1411  ;;  %v1116_v57 = vadd.f32 %v1107_v56, %v1078_v14  ;;  %v1117_v56 = vadd.f32 %v1108_v29, %v1079_v38  ;;  %v1862_v38 = vmul.f32 %v3027_v63, %v2857_v26  ;;  %v1184_v29 = vsel %vm1182_vm5, %v3226_v15, %v3113_v58 }
 0x213   : > { %4120 = vst [vmem:[#allocation42_spill] sm:$0xff] %v3418_v5 }
 0x214   : > { %921 = vrot.lane.b32.xlu1 %v910_v24, %s2589_s12  ;;  %1868 = vrot.lane.b32.xlu0 %v1858_v30, %s2601_s27  ;;  %v1225_v24 = vsel %vm1221_vm6, %v3273_v7, %v3354_v34  ;;  %v1154_v14 = vadd.f32 %v1145_v6, %v1116_v57  ;;  %v3463_v34 = vld [vmem:[%s4042_s7] sm:$0xff]  ;;  %v1223_v6 = vsel %vm1221_vm6, %v3264_v36, %v3111_v27 }
 0x215   : > { %v1234_v50 = vadd.f32 %v1225_v24, %v1195_v16  ;;  %v949_v57 = vmul.f32 %v3039_v8, %v2951_v10  ;;  %v1185_v24 = vsel %vm1182_vm5, %v3113_v58, %v3235_v47  ;;  %v1115_v47 = vadd.f32 %v1106_v18, %v1077_v4 }
 0x216   : > { %v3447_v30 = vpop.permute.xlu1 %1488  ;;  %v3449_v5 = vpop.permute.xlu0 %724  ;;  %v1193_v59 = vadd.f32 %v1184_v29, %v1154_v14  ;;  %v1339_v27 = vsel %vm890_vm9, %v3271_v53, %v3408_v17  ;;  %v4122_v14 = vmov 2   ;;  %v1262_v18 = vsel %vm812_vm7, %v3133_v55, %v3253_v33 }
 0x217   : > { %4121 = vst [vmem:[#allocation43_spill] sm:$0xff] %v3449_v5  ;;  %v1155_v5 = vadd.f32 %v1146_v32, %v1117_v56  ;;  %v1301_v32 = vsel %vm851_vm8, %v3291_v2, %v3364_v0 }
 0x218   : > { %925 = vrot.lane.b32.xlu1 %v912_v39, %s2589_s12  ;;  %1872 = vrot.lane.b32.xlu0 %v1860_v3, %s2601_s27  ;;  %v1272_v39 = vadd.f32 %v1263_v45, %v1234_v50  ;;  %v1144_v45 = vsel %vm773_vm4, %v3081_v23, %v3246_v13  ;;  %v1232_v28 = vadd.f32 %v1223_v6, %v1193_v59  ;;  %s2604_s12 = smov 44  }
 0x219   : > { %v1194_v3 = vadd.f32 %v1185_v24, %v1155_v5  ;;  %v1311_v50 = vadd.f32 %v3364_v0, %v1273_v11  ;;  %v1261_v0 = vsel %vm812_vm7, %v3244_v12, %v3133_v55  ;;  %v1153_v7 = vadd.f32 %v1144_v45, %v1115_v47 }
 0x21a   : > { %v3467_v52 = vpop.permute.xlu1 %1564  ;;  %v3469_v16 = vpop.permute.xlu0 %728  ;;  %v1310_v13 = vadd.f32 %v1301_v32, %v1272_v39  ;;  %v1299_v5 = vsel %vm851_vm8, %v3282_v21, %v3131_v40  ;;  %v1270_v4 = vadd.f32 %v1261_v0, %v1232_v28  ;;  %v1861_v6 = vmul.f32 %v3027_v63, %v2961_v35 }
 0x21b   : > { %v1233_v23 = vadd.f32 %v1224_v25, %v1194_v3  ;;  %v1349_v11 = vadd.f32 %v3408_v17, %v1311_v50  ;;  %v951_v39 = vmul.f32 %v3039_v8, %v2961_v35  ;;  %v1300_v17 = vsel %vm851_vm8, %v3131_v40, %v3291_v2 }
 0x21c   : > { %1023 = vperm.xlu1 %2482, %v3463_v34   ;;  %1876 = vrot.lane.b32.xlu0 %v1862_v38, %s2601_s27  ;;  %v1348_v59 = vadd.f32 %v1339_v27, %v1310_v13  ;;  %v1222_v63 = vsel %vm1221_vm6, %v3101_v19, %v3264_v36  ;;  %v1897_v55 = vmul.f32 %v2825_v51, %v2848_v20  ;;  %vm1722_vm6 = vcmask 539648  }
 0x21d   : > { %v1271_v24 = vadd.f32 %v1262_v18, %v1233_v23  ;;  %v950_v2 = vmul.f32 %v3039_v8, %v2850_v22  ;;  %v1378_v36 = vsel %vm1374_vm10, %v3309_v54, %v3374_v49  ;;  %v1388_v19 = vadd.f32 %v3374_v49, %v1349_v11  ;;  %v4125_v18 = vld [vmem:[#allocation39_spill] sm:$0xff] }
 0x21e   : > { %v3501_v56 = vpop.permute.xlu1 %1642  ;;  %v3503_v58 = vpop.permute.xlu0 %732  ;;  %v1337_v25 = vsel %vm890_vm9, %v3262_v9, %v3153_v31  ;;  %v1376_v3 = vsel %vm1374_vm10, %v3300_v1, %v3151_v46  ;;  %v1387_v32 = vadd.f32 %v1378_v36, %v1348_v59  ;;  %v1417_v47 = vsel %vm1413_vm11, %v3289_v60, %v3420_v48  ;;  %v4129_v36 = vld [vmem:[#allocation13_spill] sm:$0xff] }
 0x21f   : > { %v1309_v40 = vadd.f32 %v1300_v17, %v1271_v24  ;;  %v1899_v49 = vmul.f32 %v2825_v51, %v2850_v22  ;;  %v1260_v13 = vsel %vm812_vm7, %v3123_v42, %v3244_v12  ;;  %v1338_v23 = vsel %vm890_vm9, %v3153_v31, %v3271_v53  ;;  %v4126_v17 = vld [vmem:[#allocation33_spill] sm:$0xff] }
 0x220   : > { %1870 = vrot.lane.b32.xlu1 %v1859_v61, %s2601_s27  ;;  %960 = vrot.lane.b32.xlu0 %v949_v57, %s2592_s18  ;;  %v1183_v61 = vsel %vm1182_vm5, %v3103_v37, %v3226_v15  ;;  %v1308_v57 = vadd.f32 %v1299_v5, %v1270_v4  ;;  %v948_v37 = vmul.f32 %v3039_v8, %v2848_v20  ;;  %vm1644_vm5 = vcmask 556032  }
 0x221   : > { %2483 = vset.pattern.permute.xlu1 %v4122_v14  ;;  %v1192_v15 = vadd.f32 %v1183_v61, %v1153_v7  ;;  %v1377_v27 = vsel %vm1374_vm10, %v3151_v46, %v3309_v54  ;;  %v1298_v0 = vsel %vm851_vm8, %v3121_v44, %v3282_v21  ;;  %v1347_v5 = vadd.f32 %v1338_v23, %v1309_v40 }
 0x222   : > { %v3518_v38 = vpop.permute.xlu1 %726  ;;  %v3520_v29 = vpop.permute.xlu0 %1675  ;;  %v1346_v50 = vadd.f32 %v1337_v25, %v1308_v57  ;;  %v1427_v14 = vadd.f32 %v3420_v48, %v1388_v19  ;;  %v1426_v11 = vadd.f32 %v1417_v47, %v1387_v32  ;;  %v952_v53 = vmul.f32 %v3039_v8, %v2857_v26  ;;  %v4123_v8 = vld [vmem:[#allocation17_spill] sm:$0xff]  ;;  %v4124_v48 = vld [vmem:[#allocation31_spill] sm:$0xff]  ;;  %v4127_v57 = vld [vmem:[#allocation14_spill] sm:$0xff] }
 0x223   : > { %v1231_v28 = vadd.f32 %v1222_v63, %v1192_v15  ;;  %v1386_v46 = vadd.f32 %v1377_v27, %v1347_v5  ;;  %v1901_v44 = vmul.f32 %v2825_v51, %v2857_v26  ;;  %v1336_v31 = vsel %vm890_vm9, %v3143_v43, %v3262_v9  ;;  %v4131_v32 = vld [vmem:[#allocation21_spill] sm:$0xff]  ;;  %v4133_v5 = vld [vmem:[#allocation18_spill] sm:$0xff] }
 0x224   : > { %1874 = vrot.lane.b32.xlu1 %v1861_v6, %s2601_s27  ;;  %964 = vrot.lane.b32.xlu0 %v951_v39, %s2592_s18  ;;  %v1385_v7 = vadd.f32 %v1376_v3, %v1346_v50  ;;  %v1415_v54 = vsel %vm1413_vm11, %v3280_v41, %v3173_v62  ;;  %v1453_v6 = vsel %vm929_vm12, %v4124_v48, %v4123_v8  ;;  %v4132_v50 = vld [vmem:[#allocation28_spill] sm:$0xff] }
 0x225   : > { %v1269_v42 = vadd.f32 %v1260_v13, %v1231_v28  ;;  %v1416_v39 = vsel %vm1413_vm11, %v3173_v62, %v3289_v60  ;;  %v1455_v59 = vsel %vm929_vm12, %v4126_v17, %v4125_v18  ;;  %v1465_v9 = vadd.f32 %v4125_v18, %v1427_v14  ;;  %v4130_v28 = vld [vmem:[#allocation11_spill] sm:$0xff] }
 0x226   : > { %v3550_v33 = vpop.permute.xlu1 %730  ;;  %v3552_v45 = vpop.permute.xlu0 %1679  ;;  %v1424_v61 = vadd.f32 %v1415_v54, %v1385_v7  ;;  %v1375_v24 = vsel %vm1374_vm10, %v4127_v57, %v3300_v1  ;;  %v1454_v15 = vsel %vm929_vm12, %v4123_v8, %v4126_v17  ;;  %v1464_v62 = vadd.f32 %v1455_v59, %v1426_v11  ;;  %v4134_v14 = vld [vmem:[#allocation35_spill] sm:$0xff] }
 0x227   : > { %v1307_v21 = vadd.f32 %v1298_v0, %v1269_v42  ;;  %v3628_v19 = vmul.f32 %v4129_v36, %v2857_v26  ;;  %v1898_v25 = vmul.f32 %v2825_v51, %v2951_v10  ;;  %v987_v3 = vmul.f32 %v4130_v28, %v2848_v20 }
 0x228   : > { %958 = vrot.lane.b32.xlu1 %v948_v37, %s2592_s18  ;;  %1907 = vrot.lane.b32.xlu0 %v1897_v55, %s2602_s30  ;;  %v1462_v37 = vadd.f32 %v1453_v6, %v1424_v61  ;;  %v1425_v55 = vadd.f32 %v1416_v39, %v1386_v46  ;;  %v1491_v47 = vsel %vm968_vm13, %v4132_v50, %v4131_v32  ;;  %v4135_v46 = vld [vmem:[#allocation16_spill] sm:$0xff]  ;;  %vm1956_vm10 = vcmask 367616  }
 0x229   : > { %v1345_v1 = vadd.f32 %v1336_v31, %v1307_v21  ;;  %v1503_v13 = vadd.f32 %v3447_v30, %v1465_v9  ;;  %v1900_v0 = vmul.f32 %v2825_v51, %v2961_v35  ;;  %v1529_v42 = vsel %vm1007_vm15, %v4134_v14, %v4133_v5  ;;  %v4137_v21 = vld [vmem:[#allocation36_spill] sm:$0xff] }
 0x22a   : > { %v3580_v4 = vpop.permute.xlu1 %1673  ;;  %v3582_v12 = vpop.permute.xlu0 %763  ;;  %v989_v51 = vmul.f32 %v4130_v28, %v2850_v22  ;;  %v1530_v8 = vsel %vm1007_vm15, %v4133_v5, %v4137_v21  ;;  %v4138_v61 = vld [vmem:[#allocation40_spill] sm:$0xff] }
 0x22b   : > { %v1384_v7 = vadd.f32 %v1375_v24, %v1345_v1  ;;  %v1531_v18 = vsel %vm1007_vm15, %v4137_v21, %v4138_v61  ;;  %v4146_v21 = vld [vmem:[#allocation42_spill] sm:$0xff] }
 0x22c   : > { %962 = vrot.lane.b32.xlu1 %v950_v2, %s2592_s18  ;;  %1911 = vrot.lane.b32.xlu0 %v1899_v49, %s2602_s30  ;;  %v4128_v2 = vld [vmem:[#allocation29_spill] sm:$0xff]  ;;  %v1463_v49 = vadd.f32 %v1454_v15, %v1425_v55  ;;  %v3687_v55 = vmul.f32 %v4129_v36, %v2951_v10 }
 0x22d   : > { %v1493_v40 = vsel %vm968_vm13, %v4128_v2, %v3447_v30  ;;  %v1500_v30 = vadd.f32 %v1491_v47, %v1462_v37  ;;  %v1492_v31 = vsel %vm968_vm13, %v4131_v32, %v4128_v2  ;;  %v4140_v2 = vld [vmem:[#allocation25_spill] sm:$0xff]  ;;  %v991_v47 = vmul.f32 %v4130_v28, %v2857_v26 }
 0x22e   : > { %v3606_v43 = vpop.permute.xlu1 %1677  ;;  %v3608_v63 = vpop.permute.xlu0 %767  ;;  %v1502_v11 = vadd.f32 %v1493_v40, %v1464_v62  ;;  %v1501_v39 = vadd.f32 %v1492_v31, %v1463_v49  ;;  %v4139_v62 = vld [vmem:[#allocation32_spill] sm:$0xff] }
 0x22f   : > { %v3619_v60 = vsel %vm1683_vm14, %v3606_v43, %v3552_v45  ;;  %v1538_v6 = vadd.f32 %v1529_v42, %v1500_v30  ;;  %v1570_v37 = vsel %vm1566_vm1, %v4139_v62, %v3467_v52  ;;  %v1569_v49 = vsel %vm1566_vm1, %v4140_v2, %v4139_v62  ;;  %v4144_v42 = vld [vmem:[#allocation38_spill] sm:$0xff] }
 0x230   : > { %966 = vrot.lane.b32.xlu1 %v952_v53, %s2592_s18  ;;  %1915 = vrot.lane.b32.xlu0 %v1901_v44, %s2602_s30  ;;  %v1414_v44 = vsel %vm1413_vm11, %v4135_v46, %v3280_v41  ;;  %v1541_v41 = vadd.f32 %v4138_v61, %v1503_v13  ;;  %v1540_v57 = vadd.f32 %v1531_v18, %v1502_v11  ;;  %s2605_s18 = smov 21   ;;  %vm1995_vm11 = vcmask 359424  }
 0x231   : > { %v1423_v9 = vadd.f32 %v1414_v44, %v1384_v7  ;;  %v1539_v15 = vadd.f32 %v1530_v8, %v1501_v39  ;;  %v4145_v44 = vld [vmem:[#allocation19_spill] sm:$0xff]  ;;  %v4148_v39 = vld [vmem:[#allocation12_spill] sm:$0xff] }
 0x232   : > { %v3638_v23 = vpop.permute.xlu1 %1681  ;;  %v3640_v27 = vpop.permute.xlu0 %771  ;;  %v1579_v30 = vadd.f32 %v1570_v37, %v1540_v57  ;;  %v4147_v8 = vld [vmem:[#allocation27_spill] sm:$0xff]  ;;  %v1937_v61 = vmul.f32 %v4148_v39, %v2951_v10 }
 0x233   : > { %v3650_v53 = vsel %vm1683_vm14, %v3552_v45, %v3638_v23  ;;  %v4136_v45 = vld [vmem:[#allocation15_spill] sm:$0xff] }
 0x234   : > { %1909 = vrot.lane.b32.xlu1 %v1898_v25, %s2602_s30  ;;  %997 = vrot.lane.b32.xlu0 %v987_v3, %s2591_s17  ;;  %v1452_v54 = vsel %vm929_vm12, %v4136_v45, %v4124_v48  ;;  %v4142_v25 = vld [vmem:[#allocation22_spill] sm:$0xff]  ;;  %v4143_v3 = vld [vmem:[#allocation37_spill] sm:$0xff]  ;;  %v1578_v45 = vadd.f32 %v1569_v49, %v1539_v15  ;;  %v4151_v37 = vld [vmem:[#allocation23_spill] sm:$0xff] }
 0x235   : > { %v1461_v1 = vadd.f32 %v1452_v54, %v1423_v9  ;;  %v1607_v32 = vsel %vm1605_vm2, %v4143_v3, %v4142_v25  ;;  %v1608_v11 = vsel %vm1605_vm2, %v4142_v25, %v4144_v42 }
 0x236   : > { %v766_v17 = vpop.permute.xlu1 %765  ;;  %v3672_v59 = vpop.permute.xlu0 %1714 }
 0x237   : > { %v3676_v48 = vsel %vm773_vm4, %v3582_v12, %v766_v17  ;;  %v3680_v24 = vsel %vm773_vm4, %v766_v17, %v3608_v63  ;;  %v4141_v12 = vld [vmem:[#allocation30_spill] sm:$0xff]  ;;  %v4150_v17 = vld [vmem:[#allocation41_spill] sm:$0xff] }
 0x238   : > { %1913 = vrot.lane.b32.xlu1 %v1900_v0, %s2602_s30  ;;  %1001 = vrot.lane.b32.xlu0 %v989_v51, %s2591_s17  ;;  %v1568_v40 = vsel %vm1566_vm1, %v4141_v12, %v4140_v2  ;;  %v1580_v0 = vadd.f32 %v3467_v52, %v1541_v41  ;;  %v1490_v52 = vsel %vm968_vm13, %v4145_v44, %v4132_v50  ;;  %v4149_v50 = vld [vmem:[#allocation34_spill] sm:$0xff] }
 0x239   : > { %v1577_v13 = vadd.f32 %v1568_v40, %v1538_v6  ;;  %v1499_v54 = vadd.f32 %v1490_v52, %v1461_v1  ;;  %v988_v6 = vmul.f32 %v4130_v28, %v2951_v10  ;;  %v1646_v18 = vsel %vm1644_vm5, %v4149_v50, %v4147_v8 }
 0x23a   : > { %v770_v7 = vpop.permute.xlu1 %769  ;;  %v3703_v5 = vpop.permute.xlu0 %1718  ;;  %v1617_v41 = vadd.f32 %v1608_v11, %v1578_v45  ;;  %v1609_v9 = vsel %vm1605_vm2, %v4144_v42, %v4150_v17  ;;  %v1619_v57 = vadd.f32 %v4150_v17, %v1580_v0  ;;  %v1528_v2 = vsel %vm1007_vm15, %v4151_v37, %v4134_v14  ;;  %v4155_v17 = vld [vmem:[#allocation20_spill] sm:$0xff] }
 0x23b   : > { %v3710_v51 = vsel %vm773_vm4, %v3608_v63, %v770_v7  ;;  %v3714_v46 = vsel %vm773_vm4, %v770_v7, %v3640_v27  ;;  %v1616_v31 = vadd.f32 %v1607_v32, %v1577_v13  ;;  %v1647_v63 = vsel %vm1644_vm5, %v4147_v8, %v4146_v21 }
 0x23c   : > { %2011 = vperm.xlu1 %2483, %v3463_v34   ;;  %1005 = vrot.lane.b32.xlu0 %v991_v47, %s2591_s17  ;;  %v1618_v40 = vadd.f32 %v1609_v9, %v1579_v30  ;;  %v1685_v1 = vsel %vm1683_vm14, %v3520_v29, %v3606_v43  ;;  %v1656_v32 = vadd.f32 %v1647_v63, %v1617_v41  ;;  %v4152_v7 = vmov 0   ;;  %v4153_v63 = vld [vmem:[#allocation43_spill] sm:$0xff] }
 0x23d   : > { %v1648_v47 = vsel %vm1644_vm5, %v4146_v21, %v3501_v56  ;;  %v1655_v49 = vadd.f32 %v1646_v18, %v1616_v31  ;;  %v705_v14 = vmul.f32 %v4129_v36, %v2848_v20  ;;  %v990_v43 = vmul.f32 %v4130_v28, %v2961_v35 }
 0x23e   : > { %v1713_v15 = vpop.permute.xlu1 %1712  ;;  %v3735_v62 = vpop.permute.xlu0 %802  ;;  %v1939_v13 = vmul.f32 %v4148_v39, %v2961_v35  ;;  %v1936_v0 = vmul.f32 %v4148_v39, %v2848_v20  ;;  %v1537_v42 = vadd.f32 %v1528_v2, %v1499_v54  ;;  %v1658_v11 = vadd.f32 %v3501_v56, %v1619_v57  ;;  %v4156_v2 = vld [vmem:[#allocation10_spill] sm:$0xff] }
 0x23f   : > { %v3745_v25 = vsel %vm1722_vm6, %v1713_v15, %v3672_v59  ;;  %v1694_v30 = vadd.f32 %v1685_v1, %v1655_v49  ;;  %v1695_v44 = vadd.f32 %v3619_v60, %v1656_v32  ;;  %v1657_v45 = vadd.f32 %v1648_v47, %v1618_v40  ;;  %v4154_v60 = vld [vmem:[#allocation24_spill] sm:$0xff] }
 0x240   : > { %999 = vrot.lane.b32.xlu1 %v988_v6, %s2591_s17  ;;  %1948 = vrot.lane.b32.xlu0 %v1937_v61, %s2603_s11  ;;  %v748_v28 = vadd.f32 %v3503_v58, %v3628_v19  ;;  %v735_v54 = vsel %vm734_vm3, %v4153_v63, %v3518_v38  ;;  %v1567_v19 = vsel %vm1566_vm1, %v4154_v60, %v4141_v12  ;;  %vm1800_vm4 = vcmask 523264  }
 0x241   : > { %2484 = vset.pattern.permute.xlu1 %v4152_v7  ;;  %v1697_v61 = vadd.f32 %v3638_v23, %v1658_v11  ;;  %v1576_v41 = vadd.f32 %v1567_v19, %v1537_v42  ;;  %v1606_v9 = vsel %vm1605_vm2, %v4155_v17, %v4143_v3  ;;  %v1696_v57 = vadd.f32 %v3650_v53, %v1657_v45 }
 0x242   : > { %v1717_v52 = vpop.permute.xlu1 %1716  ;;  %v807_v31 = vpop.permute.xlu0 %806  ;;  %v787_v18 = vadd.f32 %v3640_v27, %v748_v28  ;;  %v1975_v12 = vmul.f32 %v4156_v2, %v2848_v20  ;;  %v744_v40 = vadd.f32 %v735_v54, %v705_v14  ;;  %v737_v3 = vsel %vm734_vm3, %v3469_v16, %v3550_v33 }
 0x243   : > { %v1724_v21 = vsel %vm1722_vm6, %v3672_v59, %v1717_v52  ;;  %v1725_v8 = vsel %vm1722_vm6, %v1717_v52, %v3703_v5  ;;  %v736_v59 = vsel %vm734_vm3, %v3518_v38, %v3469_v16  ;;  %v707_v32 = vmul.f32 %v4129_v36, %v2850_v22 }
 0x244   : > { %v3772_v56 = vadd.f32 %v1724_v21, %v1694_v30  ;;  %v3774_v6 = vadd.f32 %v1725_v8, %v1695_v44  ;;  %1003 = vrot.lane.b32.xlu1 %v990_v43, %s2591_s17  ;;  %1952 = vrot.lane.b32.xlu0 %v1939_v13, %s2603_s11  ;;  %v745_v27 = vadd.f32 %v736_v59, %v3687_v55 }
 0x245   : > { %v738_v55 = vsel %vm734_vm3, %v3550_v33, %v3503_v58  ;;  %v1938_v47 = vmul.f32 %v4148_v39, %v2850_v22  ;;  %v1615_v16 = vadd.f32 %v1606_v9, %v1576_v41  ;;  %v783_v49 = vadd.f32 %v3676_v48, %v744_v40  ;;  %v4157_v48 = vld [vmem:[#allocation26_spill] sm:$0xff] }
 0x246   : > { %v1721_v15 = vpop.permute.xlu1 %1720  ;;  %v811_v37 = vpop.permute.xlu0 %810  ;;  %v784_v14 = vadd.f32 %v3680_v24, %v745_v27  ;;  %v746_v7 = vadd.f32 %v737_v3, %v707_v32  ;;  %v1645_v24 = vsel %vm1644_vm5, %v4157_v48, %v4149_v50  ;;  %v1684_v30 = vsel %vm1683_vm14, %v3580_v4, %v3520_v29 }
 0x247   : > { %v1726_v38 = vsel %vm1722_vm6, %v3703_v5, %v1721_v15  ;;  %v3794_v1 = vadd.f32 %v1721_v15, %v1697_v61  ;;  %v3796_v23 = vadd.f32 %v811_v37, %v787_v18  ;;  %v708_v5 = vmul.f32 %v4129_v36, %v2961_v35 }
 0x248   : > { %v1735_v53 = vadd.f32 %v1726_v38, %v1696_v57  ;;  %1946 = vrot.lane.b32.xlu1 %v1936_v0, %s2603_s11  ;;  %1985 = vrot.lane.b32.xlu0 %v1975_v12, %s2604_s12  ;;  %v1977_v0 = vmul.f32 %v4156_v2, %v2850_v22  ;;  %v1654_v44 = vadd.f32 %v1645_v24, %v1615_v16  ;;  %vm1761_vm3 = vcmask 531456   ;;  %v662_v57 = vld [vmem:[%s4039_s4] sm:$0xff] }
 0x249   : > { %v747_v58 = vadd.f32 %v738_v55, %v708_v5  ;;  %v785_v52 = vadd.f32 %v3710_v51, %v746_v7  ;;  %v1979_v8 = vmul.f32 %v4156_v2, %v2857_v26  ;;  %v1978_v18 = vmul.f32 %v4156_v2, %v2961_v35 }
 0x24a   : > { %v805_v43 = vpop.permute.xlu1 %804  ;;  %v1754_v13 = vpop.permute.xlu0 %1753  ;;  %v1693_v54 = vadd.f32 %v1684_v30, %v1654_v44  ;;  %vm2607_vm14 = vmmov 1  }
 0x24b   : > { %v813_v36 = vsel %vm812_vm7, %v3735_v62, %v805_v43  ;;  %v814_v42 = vsel %vm812_vm7, %v805_v43, %v807_v31  ;;  %v1940_v62 = vmul.f32 %v4148_v39, %v2857_v26  ;;  %v786_v45 = vadd.f32 %v3714_v46, %v747_v58 }
 0x24c   : > { %v822_v33 = vadd.f32 %v813_v36, %v783_v49  ;;  %v823_v11 = vadd.f32 %v814_v42, %v784_v14  ;;  %1950 = vrot.lane.b32.xlu1 %v1938_v47, %s2603_s11  ;;  %1989 = vrot.lane.b32.xlu0 %v1977_v0, %s2604_s12  ;;  %v1732_v4 = vadd.f32 %v3745_v25, %v1693_v54 }
 0x24d   : > { %v1976_v39 = vmul.f32 %v4156_v2, %v2951_v10 }
 0x24e   : > { %v809_v28 = vpop.permute.xlu1 %808  ;;  %v1758_v21 = vpop.permute.xlu0 %1757 }
 0x24f   : > { %v815_v63 = vsel %vm812_vm7, %v807_v31, %v809_v28  ;;  %v816_v50 = vsel %vm812_vm7, %v809_v28, %v811_v37  ;;  %vm1839_vm7 = vcmask 392192  }
 0x250   : > { %v824_v60 = vadd.f32 %v815_v63, %v785_v52  ;;  %v825_v29 = vadd.f32 %v816_v50, %v786_v45  ;;  %1954 = vrot.lane.b32.xlu1 %v1940_v62, %s2603_s11  ;;  %1993 = vrot.lane.b32.xlu0 %v1979_v8, %s2604_s12 }
 0x252   : > { %v1752_v51 = vpop.permute.xlu1 %1751  ;;  %v842_v46 = vpop.permute.xlu0 %841 }
 0x253   : > { %v1762_v19 = vsel %vm1761_vm3, %v1752_v51, %v1754_v13 }
 0x254   : > { %v1771_v31 = vadd.f32 %v1762_v19, %v1732_v4  ;;  %1987 = vrot.lane.b32.xlu1 %v1976_v39, %s2604_s12  ;;  %681 = vperm.xlu0 %2480, %v3463_v34  }
 0x256   : > { %v1756_v59 = vpop.permute.xlu1 %1755  ;;  %v846_v61 = vpop.permute.xlu0 %845 }
 0x257   : > { %v1763_v41 = vsel %vm1761_vm3, %v1754_v13, %v1756_v59  ;;  %v1764_v25 = vsel %vm1761_vm3, %v1756_v59, %v1758_v21 }
 0x258   : > { %v1772_v17 = vadd.f32 %v1763_v41, %v3772_v56  ;;  %v1773_v9 = vadd.f32 %v1764_v25, %v3774_v6  ;;  %1991 = vrot.lane.b32.xlu1 %v1978_v18, %s2604_s12 }
 0x25a   : > { %v1760_v34 = vpop.permute.xlu1 %1759  ;;  %v850_v15 = vpop.permute.xlu0 %849 }
 0x25b   : > { %v1765_v37 = vsel %vm1761_vm3, %v1758_v21, %v1760_v34  ;;  %v1775_v2 = vadd.f32 %v1760_v34, %v3794_v1  ;;  %v3857_v12 = vadd.f32 %v850_v15, %v3796_v23 }
 0x25c   : > { %v1774_v40 = vadd.f32 %v1765_v37, %v1735_v53  ;;  %670 = vperm.xlu1 %2484, %v662_v57  }
 0x25e   : > { %v844_v56 = vpop.permute.xlu1 %843  ;;  %v1793_v38 = vpop.permute.xlu0 %1792 }
 0x25f   : > { %v852_v6 = vsel %vm851_vm8, %v842_v46, %v844_v56  ;;  %v853_v27 = vsel %vm851_vm8, %v844_v56, %v846_v61 }
 0x260   : > { %v3861_v3 = vadd.f32 %v852_v6, %v822_v33  ;;  %v3863_v32 = vadd.f32 %v853_v27, %v823_v11 }
 0x262   : > { %v848_v5 = vpop.permute.xlu1 %847  ;;  %v1797_v55 = vpop.permute.xlu0 %1796 }
 0x263   : > { %v854_v47 = vsel %vm851_vm8, %v846_v61, %v848_v5  ;;  %v855_v1 = vsel %vm851_vm8, %v848_v5, %v850_v15  ;;  %vm1878_vm8 = vcmask 384000  }
 0x264   : > { %v3867_v23 = vadd.f32 %v854_v47, %v824_v60  ;;  %v3869_v53 = vadd.f32 %v855_v1, %v825_v29 }
 0x266   : > { %v1791_v16 = vpop.permute.xlu1 %1790  ;;  %v881_v49 = vpop.permute.xlu0 %880 }
 0x267   : > { %v1801_v14 = vsel %vm1800_vm4, %v1791_v16, %v1793_v38 }
 0x268   : > { %v1810_v43 = vadd.f32 %v1801_v14, %v1771_v31 }
 0x26a   : > { %v1795_v13 = vpop.permute.xlu1 %1794  ;;  %v885_v0 = vpop.permute.xlu0 %884 }
 0x26b   : > { %v1802_v7 = vsel %vm1800_vm4, %v1793_v38, %v1795_v13  ;;  %v1803_v36 = vsel %vm1800_vm4, %v1795_v13, %v1797_v55 }
 0x26c   : > { %v1811_v42 = vadd.f32 %v1802_v7, %v1772_v17  ;;  %v1812_v58 = vadd.f32 %v1803_v36, %v1773_v9 }
 0x26e   : > { %v1799_v33 = vpop.permute.xlu1 %1798  ;;  %v889_v11 = vpop.permute.xlu0 %888 }
 0x26f   : > { %v1804_v48 = vsel %vm1800_vm4, %v1797_v55, %v1799_v33  ;;  %v1814_v24 = vadd.f32 %v1799_v33, %v1775_v2  ;;  %v904_v13 = vadd.f32 %v889_v11, %v3857_v12 }
 0x270   : > { %v1813_v30 = vadd.f32 %v1804_v48, %v1774_v40 }
 0x272   : > { %v883_v62 = vpop.permute.xlu1 %882  ;;  %v1832_v44 = vpop.permute.xlu0 %1831 }
 0x273   : > { %v891_v14 = vsel %vm890_vm9, %v881_v49, %v883_v62 }
 0x276   : > { %v887_v52 = vpop.permute.xlu1 %886  ;;  %v1836_v45 = vpop.permute.xlu0 %1835 }
 0x277   : > { %v893_v33 = vsel %vm890_vm9, %v885_v0, %v887_v52 }
 0x27a   : > { %v1830_v28 = vpop.permute.xlu1 %1829  ;;  %v920_v21 = vpop.permute.xlu0 %919 }
 0x27b   : > { %v1840_v8 = vsel %vm1839_vm7, %v1830_v28, %v1832_v44 }
 0x27c   : > { %v3875_v63 = vadd.f32 %v1840_v8, %v1810_v43  ;;  %v892_v43 = vsel %vm890_vm9, %v883_v62, %v885_v0  ;;  %v902_v0 = vadd.f32 %v893_v33, %v3867_v23 }
 0x27e   : > { %v1834_v50 = vpop.permute.xlu1 %1833  ;;  %v924_v54 = vpop.permute.xlu0 %923 }
 0x27f   : > { %v1841_v60 = vsel %vm1839_vm7, %v1832_v44, %v1834_v50  ;;  %v1842_v29 = vsel %vm1839_vm7, %v1834_v50, %v1836_v45 }
 0x280   : > { %v3877_v4 = vadd.f32 %v1841_v60, %v1811_v42  ;;  %v3879_v51 = vadd.f32 %v1842_v29, %v1812_v58  ;;  %v900_v42 = vadd.f32 %v891_v14, %v3861_v3  ;;  %v901_v58 = vadd.f32 %v892_v43, %v3863_v32 }
 0x282   : > { %v1838_v46 = vpop.permute.xlu1 %1837  ;;  %v928_v39 = vpop.permute.xlu0 %927 }
 0x283   : > { %v1843_v19 = vsel %vm1839_vm7, %v1836_v45, %v1838_v46  ;;  %v3881_v31 = vadd.f32 %v1838_v46, %v1814_v24  ;;  %v894_v24 = vsel %vm890_vm9, %v887_v52, %v889_v11  ;;  %vm1917_vm9 = vcmask 375808  }
 0x284   : > { %v3883_v59 = vadd.f32 %v1843_v19, %v1813_v30  ;;  %v943_v30 = vadd.f32 %v928_v39, %v904_v13 }
 0x286   : > { %v3885_v61 = vpop.permute.xlu0 %1868  ;;  %v922_v25 = vpop.permute.xlu1 %921 }
 0x287   : > { %v930_v7 = vsel %vm929_vm12, %v920_v21, %v922_v25  ;;  %v931_v36 = vsel %vm929_vm12, %v922_v25, %v924_v54  ;;  %v903_v21 = vadd.f32 %v894_v24, %v3869_v53 }
 0x288   : > { %v939_v12 = vadd.f32 %v930_v7, %v900_v42  ;;  %v940_v44 = vadd.f32 %v931_v36, %v901_v58 }
 0x28a   : > { %v3887_v18 = vpop.permute.xlu0 %1872  ;;  %v926_v57 = vpop.permute.xlu1 %925 }
 0x28b   : > { %v932_v28 = vsel %vm929_vm12, %v924_v54, %v926_v57  ;;  %v933_v3 = vsel %vm929_vm12, %v926_v57, %v928_v39  ;;  %vm1056_vm12 = vcmask 171008  }
 0x28c   : > { %v941_v19 = vadd.f32 %v932_v28, %v902_v0  ;;  %v942_v54 = vadd.f32 %v933_v3, %v903_v21 }
 0x28e   : > { %v3889_v41 = vpop.permute.xlu0 %1876 }
 0x292   : > { %v961_v17 = vpop.permute.xlu0 %960 }
 0x296   : > { %v965_v9 = vpop.permute.xlu0 %964 }
 0x29a   : > { %v3891_v34 = vpop.permute.xlu0 %1907 }
 0x29b   : > { %v1024_v15 = vpop.permute.xlu1 %1023 }
 0x29e   : > { %v3893_v37 = vpop.permute.xlu0 %1911 }
 0x29f   : > { %v3895_v2 = vpop.permute.xlu1 %1870 }
 0x2a0   : > { %v1879_v3 = vsel %vm1878_vm8, %v3885_v61, %v3895_v2 }
 0x2a1   : > { %v1888_v61 = vadd.f32 %v1879_v3, %v3875_v63  ;;  %v4159_v3 = vld [vmem:[#allocation7_spill] sm:$0xff] }
 0x2a2   : > { %v3899_v56 = vpop.permute.xlu0 %1915 }
 0x2a3   : > { %v3897_v40 = vpop.permute.xlu1 %1874 }
 0x2a6   : > { %v998_v6 = vpop.permute.xlu0 %997 }
 0x2a7   : > { %v959_v38 = vpop.permute.xlu1 %958 }
 0x2a8   : > { %v969_v49 = vsel %vm968_vm13, %v959_v38, %v961_v17 }
 0x2a9   : > { %v978_v8 = vadd.f32 %v969_v49, %v939_v12 }
 0x2aa   : > { %v1002_v55 = vpop.permute.xlu0 %1001 }
 0x2ab   : > { %v963_v27 = vpop.permute.xlu1 %962 }
 0x2ac   : > { %v970_v62 = vsel %vm968_vm13, %v961_v17, %v963_v27  ;;  %v971_v50 = vsel %vm968_vm13, %v963_v27, %v965_v9 }
 0x2ad   : > { %v979_v11 = vadd.f32 %v970_v62, %v940_v44  ;;  %v980_v57 = vadd.f32 %v971_v50, %v941_v19  ;;  %v1881_v50 = vsel %vm1878_vm8, %v3887_v18, %v3897_v40 }
 0x2ae   : > { %v1006_v1 = vpop.permute.xlu0 %1005 }
 0x2af   : > { %v967_v5 = vpop.permute.xlu1 %966 }
 0x2b0   : > { %v982_v32 = vadd.f32 %v967_v5, %v943_v30  ;;  %v972_v60 = vsel %vm968_vm13, %v965_v9, %v967_v5  ;;  %vm2044_vm13 = vcmask 343040  }
 0x2b1   : > { %v981_v23 = vadd.f32 %v972_v60, %v942_v54 }
 0x2b2   : > { %v3918_v45 = vpop.permute.xlu0 %1948  ;;  %v1021_v17 = vadd.f32 %v1006_v1, %v982_v32  ;;  %v1892_v32 = vadd.f32 %v3889_v41, %v3881_v31 }
 0x2b3   : > { %v3901_v47 = vpop.permute.xlu1 %1909 }
 0x2b4   : > { %v1030_v36 = vadd.f32 %v1024_v15, %v1021_v17  ;;  %v1918_v0 = vsel %vm1917_vm9, %v3891_v34, %v3901_v47  ;;  %v1919_v21 = vsel %vm1917_vm9, %v3901_v47, %v3893_v37  ;;  %v1882_v34 = vsel %vm1878_vm8, %v3897_v40, %v3889_v41 }
 0x2b5   : > { %v1890_v41 = vadd.f32 %v1881_v50, %v3879_v51  ;;  %v1891_v40 = vadd.f32 %v1882_v34, %v3883_v59 }
 0x2b6   : > { %v1953_v38 = vpop.permute.xlu0 %1952 }
 0x2b7   : > { %v3903_v16 = vpop.permute.xlu1 %1913 }
 0x2ba   : > { %v1986_v49 = vpop.permute.xlu0 %1985 }
 0x2bb   : > { %v3913_v48 = vpop.permute.xlu1 %2011 }
 0x2bf   : > { %v1000_v52 = vpop.permute.xlu1 %999 }
 0x2c0   : > { %v1008_v29 = vsel %vm1007_vm15, %v998_v6, %v1000_v52  ;;  %v1009_v46 = vsel %vm1007_vm15, %v1000_v52, %v1002_v55  ;;  %v1990_v52 = vpop.permute.xlu0 %1989 }
 0x2c1   : > { %v1017_v25 = vadd.f32 %v1008_v29, %v978_v8  ;;  %v1018_v39 = vadd.f32 %v1009_v46, %v979_v11  ;;  %v1920_v29 = vsel %vm1917_vm9, %v3893_v37, %v3903_v16 }
 0x2c3   : > { %v1026_v53 = vadd.f32 %v1024_v15, %v1017_v25  ;;  %v1027_v14 = vadd.f32 %v1024_v15, %v1018_v39  ;;  %v1004_v43 = vpop.permute.xlu1 %1003 }
 0x2c4   : > { %v1010_v13 = vsel %vm1007_vm15, %v1002_v55, %v1004_v43  ;;  %v1011_v27 = vsel %vm1007_vm15, %v1004_v43, %v1006_v1  ;;  %v1035_v55 = vmax.f32 %v1030_v36, 0.0  ;;  %vm4007_vm15 = vmpackc.low %vm392_vm0, %vm2607_vm14  ;;  %vm2103_vm0 = vcmask 97280  }
 0x2c5   : > { %v1031_v9 = vmax.f32 %v1026_v53, 0.0  ;;  %v1032_v5 = vmax.f32 %v1027_v14, 0.0  ;;  %v1019_v6 = vadd.f32 %v1010_v13, %v980_v57  ;;  %v1020_v7 = vadd.f32 %v1011_v27, %v981_v23  ;;  %v1994_v53 = vpop.permute.xlu0 %1993 }
 0x2c6   : > { %v1040_v11 = vmin.f32 %v1035_v55, 6.0  ;;  %v1929_v57 = vadd.f32 %v1920_v29, %v1890_v41 }
 0x2c7   : > { %v1036_v42 = vmin.f32 %v1031_v9, 6.0  ;;  %v1037_v58 = vmin.f32 %v1032_v5, 6.0  ;;  %v1028_v33 = vadd.f32 %v1024_v15, %v1019_v6  ;;  %v1029_v24 = vadd.f32 %v1024_v15, %v1020_v7  ;;  %v1947_v30 = vpop.permute.xlu1 %1946 }
 0x2c8   : > { %v1880_v15 = vsel %vm1878_vm8, %v3895_v2, %v3887_v18  ;;  %v1931_v2 = vadd.f32 %v3899_v56, %v1892_v32  ;;  %v1957_v47 = vsel %vm1956_vm10, %v1947_v30, %v3918_v45  ;;  %v1921_v18 = vsel %vm1917_vm9, %v3903_v16, %v3899_v56 }
 0x2c9   : > { %v1033_v62 = vmax.f32 %v1028_v33, 0.0  ;;  %v1034_v12 = vmax.f32 %v1029_v24, 0.0  ;;  %1048 = vrot.lane.b32.xlu0 %v1037_v58, %s2605_s18  ;;  %1046 = vrot.lane.b32.xlu1 %v1036_v42, %s2605_s18  ;;  %v1889_v8 = vadd.f32 %v1880_v15, %v3877_v4  ;;  %v1927_v4 = vadd.f32 %v1918_v0, %v1888_v61 }
 0x2ca   : > { %v1930_v23 = vadd.f32 %v1921_v18, %v1891_v40 }
 0x2cb   : > { %v1038_v1 = vmin.f32 %v1033_v62, 6.0  ;;  %v1039_v44 = vmin.f32 %v1034_v12, 6.0  ;;  %v1951_v28 = vpop.permute.xlu1 %1950  ;;  %v1928_v60 = vadd.f32 %v1919_v21, %v1889_v8  ;;  %v1966_v19 = vadd.f32 %v1957_v47, %v1927_v4 }
 0x2cc   : > { %v1958_v63 = vsel %vm1956_vm10, %v3918_v45, %v1951_v28  ;;  %v1959_v25 = vsel %vm1956_vm10, %v1951_v28, %v1953_v38  ;;  %v4158_v28 = vld [vmem:[#allocation6_spill] sm:$0xff] }
 0x2cd   : > { %1052 = vrot.lane.b32.xlu0 %v1039_v44, %s2605_s18  ;;  %1050 = vrot.lane.b32.xlu1 %v1038_v1, %s2605_s18  ;;  %v1967_v54 = vadd.f32 %v1958_v63, %v1928_v60  ;;  %v1968_v51 = vadd.f32 %v1959_v25, %v1929_v57  ;;  %v4160_v15 = vpack.i.bf16 %v4158_v28, %v4159_v3 }
 0x2cf   : > { %v1955_v31 = vpop.permute.xlu1 %1954 }
 0x2d0   : > { %v1970_v46 = vadd.f32 %v1955_v31, %v1931_v2  ;;  %v1960_v39 = vsel %vm1956_vm10, %v1953_v38, %v1955_v31 }
 0x2d1   : > { %1054 = vrot.lane.b32.xlu1 %v1040_v11, %s2605_s18  ;;  %v1969_v43 = vadd.f32 %v1960_v39, %v1930_v23 }
 0x2d2   : > { %v2009_v14 = vadd.f32 %v1994_v53, %v1970_v46 }
 0x2d3   : > { %v1988_v45 = vpop.permute.xlu1 %1987 }
 0x2d4   : > { %v1996_v17 = vsel %vm1995_vm11, %v1986_v49, %v1988_v45  ;;  %v1997_v37 = vsel %vm1995_vm11, %v1988_v45, %v1990_v52  ;;  %v2018_v42 = vadd.f32 %v3913_v48, %v2009_v14 }
 0x2d5   : > { %v2005_v56 = vadd.f32 %v1996_v17, %v1966_v19  ;;  %v2006_v16 = vadd.f32 %v1997_v37, %v1967_v54 }
 0x2d6   : > { %v2023_v12 = vmax.f32 %v2018_v42, 0.0 }
 0x2d7   : > { %v2014_v59 = vadd.f32 %v3913_v48, %v2005_v56  ;;  %v2015_v13 = vadd.f32 %v3913_v48, %v2006_v16  ;;  %v1992_v27 = vpop.permute.xlu1 %1991 }
 0x2d8   : > { %v1998_v9 = vsel %vm1995_vm11, %v1990_v52, %v1992_v27  ;;  %v1999_v38 = vsel %vm1995_vm11, %v1992_v27, %v1994_v53  ;;  %v2028_v44 = vmin.f32 %v2023_v12, 6.0  ;;  %v2060_v12 = vld [vmem:[%s4044_s9] sm:$0x3f] }
 0x2d9   : > { %v2019_v5 = vmax.f32 %v2014_v59, 0.0  ;;  %v2020_v6 = vmax.f32 %v2015_v13, 0.0  ;;  %v2007_v7 = vadd.f32 %v1998_v9, %v1968_v51  ;;  %v2008_v36 = vadd.f32 %v1999_v38, %v1969_v43 }
 0x2db   : > { %v2024_v58 = vmin.f32 %v2019_v5, 6.0  ;;  %v2025_v33 = vmin.f32 %v2020_v6, 6.0  ;;  %v2016_v24 = vadd.f32 %v3913_v48, %v2007_v7  ;;  %v2017_v30 = vadd.f32 %v3913_v48, %v2008_v36  ;;  %v671_v32 = vpop.permute.xlu1 %670  ;;  %v682_v48 = vpop.permute.xlu0 %681 }
 0x2dc   : > { %v674_v61 = vmul.f32 %v671_v32, %v2951_v10  ;;  %v675_v8 = vmul.f32 %v671_v32, %v2850_v22  ;;  %v673_v11 = vmul.f32 %v671_v32, %v2848_v20  ;;  %v676_v52 = vmul.f32 %v671_v32, %v2961_v35 }
 0x2dd   : > { %v2021_v49 = vmax.f32 %v2016_v24, 0.0  ;;  %v2022_v62 = vmax.f32 %v2017_v30, 0.0  ;;  %2034 = vrot.lane.b32.xlu0 %v2024_v58, %s2606_s19  ;;  %2036 = vrot.lane.b32.xlu1 %v2025_v33, %s2606_s19  ;;  %v677_v34 = vmul.f32 %v671_v32, %v2857_v26  ;;  %v2512_v58 = vld [vmem:[%s2721_s15] sm:$0xff] }
 0x2de   : > { %v685_v31 = vadd.f32 %v682_v48, %v674_v61  ;;  %v686_v50 = vadd.f32 %v682_v48, %v675_v8  ;;  %v684_v47 = vadd.f32 %v682_v48, %v673_v11  ;;  %v687_v60 = vadd.f32 %v682_v48, %v676_v52  ;;  %v4161_v30 = vld [vmem:[#allocation9_spill] sm:$0xff] }
 0x2df   : > { %v2026_v55 = vmin.f32 %v2021_v49, 6.0  ;;  %v2027_v1 = vmin.f32 %v2022_v62, 6.0  ;;  %v688_v46 = vadd.f32 %v682_v48, %v677_v34  ;;  %v4162_v49 = vld [vmem:[#allocation8_spill] sm:$0xff] }
 0x2e0   : > { %v690_v29 = vmax.f32 %v685_v31, 0.0  ;;  %v691_v18 = vmax.f32 %v686_v50, 0.0  ;;  %v689_v10 = vmax.f32 %v684_v47, 0.0  ;;  %v692_v40 = vmax.f32 %v687_v60, 0.0 }
 0x2e1   : > { %2038 = vrot.lane.b32.xlu0 %v2026_v55, %s2606_s19  ;;  %2040 = vrot.lane.b32.xlu1 %v2027_v1, %s2606_s19  ;;  %v693_v26 = vmax.f32 %v688_v46, 0.0  ;;  %v4163_v62 = vpack.i.bf16 %v4161_v30, %v4162_v49 }
 0x2e2   : > { %v695_v19 = vmin.f32 %v690_v29, 6.0  ;;  %v696_v54 = vmin.f32 %v691_v18, 6.0  ;;  %v694_v25 = vmin.f32 %v689_v10, 6.0  ;;  %v697_v23 = vmin.f32 %v692_v40, 6.0  ;;  %v2059_v29 = vld [vmem:[%s4043_s8] sm:$0x3f] }
 0x2e3   : > { %v698_v51 = vmin.f32 %v693_v26, 6.0 }
 0x2e5   : > { %2042 = vrot.lane.b32.xlu0 %v2028_v44, %s2606_s19  ;;  %2486 = vrot.lane.b32.xlu1 %v4160_v15, %s2599_s25 }
 0x33b   : > { %v1047_v0 = vpop.permute.xlu1 %1046  ;;  %v1049_v21 = vpop.permute.xlu0 %1048 }
 0x33c   : > { %v1057_v20 = vsel %vm1056_vm12, %v1047_v0, %v1049_v21  ;;  %v1066_v14 = vadd.f32 %v1047_v0, %v694_v25 }
 0x33d   : > { %v1067_v39 = vadd.f32 %v1057_v20, %v695_v19 }
 0x33f   : > { %v1051_v2 = vpop.permute.xlu1 %1050  ;;  %v1053_v63 = vpop.permute.xlu0 %1052 }
 0x340   : > { %v1058_v35 = vsel %vm1056_vm12, %v1049_v21, %v1051_v2  ;;  %v1059_v53 = vsel %vm1056_vm12, %v1051_v2, %v1053_v63 }
 0x341   : > { %v1068_v17 = vadd.f32 %v1058_v35, %v696_v54  ;;  %v1069_v27 = vadd.f32 %v1059_v53, %v697_v23 }
 0x343   : > { %v1055_v4 = vpop.permute.xlu1 %1054 }
 0x344   : > { %v1060_v56 = vsel %vm1056_vm12, %v1053_v63, %v1055_v4 }
 0x345   : > { %v1070_v9 = vadd.f32 %v1060_v56, %v698_v51 }
 0x34f   : > { %v2035_v41 = vpop.permute.xlu0 %2034  ;;  %v2037_v22 = vpop.permute.xlu1 %2036 }
 0x350   : > { %v2045_v45 = vsel %vm2044_vm13, %v2035_v41, %v2037_v22  ;;  %v2054_v38 = vadd.f32 %v2035_v41, %v1066_v14 }
 0x351   : > { %v2055_v43 = vadd.f32 %v2045_v45, %v1067_v39 }
 0x352   : > { %v2505_v33 = vpack.i.bf16 %v2512_v58, %v2054_v38 }
 0x353   : > { %v2039_v37 = vpop.permute.xlu0 %2038  ;;  %v2041_v57 = vpop.permute.xlu1 %2040 }
 0x354   : > { %v2046_v16 = vsel %vm2044_vm13, %v2037_v22, %v2039_v37  ;;  %v2047_v13 = vsel %vm2044_vm13, %v2039_v37, %v2041_v57 }
 0x355   : > { %v2056_v59 = vadd.f32 %v2046_v16, %v1068_v17  ;;  %v2057_v36 = vadd.f32 %v2047_v13, %v1069_v27 }
 0x357   : > { %v2490_v5 = vpack.i.bf16 %v2056_v59, %v2055_v43  ;;  %v2043_v6 = vpop.permute.xlu0 %2042  ;;  %v2487_v55 = vpop.permute.xlu1 %2486 }
 0x358   : > { %v2048_v7 = vsel %vm2044_vm13, %v2041_v57, %v2043_v6  ;;  %v2489_v1 = vunpack.i.h.bf16 %v2487_v55  ;;  %v2488_v44 = vunpack.i.l.bf16 %v2487_v55 }
 0x359   : > { %v2058_v42 = vadd.f32 %v2048_v7, %v1070_v9  ;;  %2491 = vrot.lane.b32.xlu1 %v2490_v5, %s2599_s25 }
 0x35a   : > { %v2096_v3 = vsel %vm1800_vm4, %v2488_v44, %v2489_v1 }
 0x35b   : > { %v2495_v24 = vpack.i.bf16 %v2058_v42, %v2057_v36 }
 0x35d   : > { %2506 = vrot.lane.b32.xlu1 %v2505_v33, %s2599_s25  ;;  %2496 = vrot.lane.b32.xlu0 %v2495_v24, %s2599_s25 }
 0x361   : > { %2501 = vrot.lane.b32.xlu0 %v4163_v62, %s2599_s25 }
 0x365   : > { %2063 = vperm.xlu0 %2480, %v2060_v12  }
 0x3cb   : > { %v2492_v28 = vpop.permute.xlu1 %2491 }
 0x3cc   : > { %v2494_v15 = vunpack.i.h.bf16 %v2492_v28  ;;  %v2493_v32 = vunpack.i.l.bf16 %v2492_v28 }
 0x3ce   : > { %v2092_v0 = vsel %vm1800_vm4, %v2493_v32, %v2494_v15 }
 0x3cf   : > { %v2362_v21 = vpack.c.bf16 %v2096_v3, %v2092_v0  ;;  %v2497_v61 = vpop.permute.xlu0 %2496  ;;  %v2507_v8 = vpop.permute.xlu1 %2506 }
 0x3d0   : > { %v2509_v2 = vunpack.i.h.bf16 %v2507_v8  ;;  %v2508_v11 = vunpack.i.l.bf16 %v2507_v8  ;;  %v2499_v52 = vunpack.i.h.bf16 %v2497_v61  ;;  %v2498_v31 = vunpack.i.l.bf16 %v2497_v61 }
 0x3d1   : > { %2364 = vmatprep.subr.msk.bf16.mxu1 %vm4007_vm15, %v2362_v21 }
 0x3d2   : > { %v2091_v50 = vsel %vm1800_vm4, %v2508_v11, %v2493_v32  ;;  %v2095_v34 = vsel %vm1800_vm4, %v2509_v2, %v2488_v44  ;;  %v2093_v18 = vsel %vm1800_vm4, %v2494_v15, %v2498_v31  ;;  %v2094_v46 = vsel %vm1800_vm4, %v2498_v31, %v2499_v52 }
 0x3d3   : > { %v2365_v47 = vpack.c.bf16 %v2095_v34, %v2091_v50  ;;  %v2502_v63 = vpop.permute.xlu0 %2501 }
 0x3d4   : > { %v2504_v4 = vunpack.i.h.bf16 %v2502_v63  ;;  %v2503_v60 = vunpack.i.l.bf16 %v2502_v63 }
 0x3d5   : > { %2367 = vmatpush1.bf16.msk.msra.mxu1 %vm4007_vm15, %v2365_v47 }
 0x3d6   : > { %v2097_v10 = vsel %vm1800_vm4, %v2489_v1, %v2503_v60  ;;  %v2098_v41 = vsel %vm1800_vm4, %v2503_v60, %v2504_v4 }
 0x3d7   : > { %v2368_v22 = vpack.c.bf16 %v2098_v41, %v2094_v46  ;;  %v2371_v20 = vpack.c.bf16 %v2097_v10, %v2093_v18 }
 0x3d8   : > { %2348 = vmatmul.mubr.msk.f32.vlgmr.msra.gmra.mrb[2].mxu1 %vm2103_vm0, %v2059_v29 }
 0x3d9   : > { %2370 = vmatprep.subr.msk.bf16.mxu0 %vm4007_vm15, %v2368_v22 }
 0x3da   : > { %2373 = vmatpush1.bf16.msk.msra.mxu0 %vm4007_vm15, %v2371_v20 }
 0x3dd   : > { %2351 = vmatmul.mubr.msk.f32.vlgmr.msra.gmra.mrb[4].mxu0 %vm2103_vm0, %v2059_v29 }
 0x3e4   : > { %v2064_v40 = vpop.permute.xlu0 %2063 }
 0x4ab   : > { %v2181_v35 = vpop.f32.mrb[2].mxu1 }
 0x4ac   : > { %v2182_v19 = vadd.f32 %v2181_v35, %v2064_v40  ;;  %v2183_v54 = vpop.f32.mrb[3].mxu1 }
 0x4ad   : > { %v2184_v26 = vadd.f32 %v2183_v54, %v2064_v40 }
 0x4ae   : > { %2257 = vst [vmem:[%s372_s26] sm:$0x3f] %v2182_v19 }
 0x4af   : > { %2258 = vst [vmem:[%s372_s26 + $0x8] sm:$0x3f] %v2184_v26 }
 0x4b0   : > { %v2252_v45 = vpop.f32.mrb[4].mxu0 }
 0x4b1   : > { %v2253_v25 = vadd.f32 %v2252_v45, %v2064_v40  ;;  %v2254_v39 = vpop.f32.mrb[5].mxu0 }
 0x4b2   : > { %v2255_v17 = vadd.f32 %v2254_v39, %v2064_v40 }
 0x4b3   : > { %2259 = vst [vmem:[%s372_s26 + $0x10] sm:$0x3f] %v2253_v25 }
 0x4b4   : > { %2260 = vst [vmem:[%s372_s26 + $0x18] sm:$0x3f] %v2255_v17 }
 0x4b5 PF: > { %s21_s13 = sadd.s32 1, %s2551_s13  }
 0x4b6   : > { %p18_p2 = scmp.ge.s32.totalorder %s21_s13, 4  }
 0x4b8   :  { %20 = sbr.rel (!%p18_p2) target bundleno = 1 (0x1), region = 95 }
 0x4bf   :  { %2282 = vsyncpa [#allocation4], 1 }
 0x4c0   :  { %2284 = vsyncpa [#allocation4 + $0x1], 1 }

</bundles_post_ra>
